<compile_context>
chip_gen: v6e
topology: v6e:2x2x1
jax: 0.10.0
libtpu: 0.0.40
codegen_flags: <defaults>
</compile_context>

<pallas_src>
import functools

import jax
import jax.numpy as jnp
from jax.experimental import pallas as pl
from jax.experimental.pallas import tpu as pltpu


def _mhsa_kernel(x_ref, wq_ref, wk_ref, wv_ref, wp_ref, bp_ref, o_ref,
                 *, num_heads, scale):
    # x_ref : (1, P, C)  current batch element
    # wq/wk/wv_ref : (H, C, hd) bf16, head-major projection weights
    # wp_ref : (H, hd, C) bf16, head-major output-projection weight
    # bp_ref : (1, C) f32 proj bias
    # o_ref  : (1, P, C)
    _, P, C = x_ref.shape
    H = num_heads

    # bf16 operands for the MXU; f32 accumulation throughout.
    x = x_ref[0].astype(jnp.bfloat16)                       # (P, C)
    xh = jnp.broadcast_to(x[None], (H, P, C))               # (H, P, C)

    # Head-batched q/k/v projections (qkv_bias=False in the module config).
    q = jnp.einsum('hpc,hcd->hpd', xh, wq_ref[...],
                   preferred_element_type=jnp.float32) * scale   # (H, P, hd)
    k = jnp.einsum('hpc,hcd->hpd', xh, wk_ref[...],
                   preferred_element_type=jnp.float32)           # (H, P, hd)
    v = jnp.einsum('hpc,hcd->hpd', xh, wv_ref[...],
                   preferred_element_type=jnp.float32)           # (H, P, hd)

    # Scaled dot-product attention; softmax math in f32.
    s = jnp.einsum('hpd,hqd->hpq',
                   q.astype(jnp.bfloat16), k.astype(jnp.bfloat16),
                   preferred_element_type=jnp.float32)           # (H, P, P)
    s = s - jnp.max(s, axis=-1, keepdims=True)
    p = jnp.exp(s)
    p = p * pl.reciprocal(jnp.sum(p, axis=-1, keepdims=True), approx=True)
    # attn_drop is identity (attn_drop=0.0 / eval mode).

    ctx = jnp.einsum('hpq,hqd->hpd',
                     p.astype(jnp.bfloat16), v.astype(jnp.bfloat16),
                     preferred_element_type=jnp.float32)         # (H, P, hd)

    # Output projection: per-head matmuls summed over heads replaces the
    # lane-axis concatenate of the naive formulation.  proj_drop is identity.
    out_h = jnp.einsum('hpd,hdc->hpc',
                       ctx.astype(jnp.bfloat16), wp_ref[...],
                       preferred_element_type=jnp.float32)       # (H, P, C)
    out = jnp.sum(out_h, axis=0) + bp_ref[...]                   # (P, C)
    o_ref[0] = out.astype(o_ref.dtype)


def mhsa_pallas(x, wq, wk, wv, wp, bp, *, num_heads):
    """x: (B, P, C) f32.  wq/wk/wv/wp: (C, C) as (in, out).  bp: (C,)."""
    B, P, C = x.shape
    H = num_heads
    hd = C // H
    scale = float(hd) ** (-0.5)

    # One-time (wrapper-side, plain XLA) weight re-arrangement + bf16 cast.
    wq_h = wq.reshape(C, H, hd).transpose(1, 0, 2).astype(jnp.bfloat16)  # (H, C, hd)
    wk_h = wk.reshape(C, H, hd).transpose(1, 0, 2).astype(jnp.bfloat16)
    wv_h = wv.reshape(C, H, hd).transpose(1, 0, 2).astype(jnp.bfloat16)
    wp_h = wp.reshape(H, hd, C).astype(jnp.bfloat16)                     # (H, hd, C)
    bp2 = bp.reshape(1, C).astype(jnp.float32)

    kernel = functools.partial(_mhsa_kernel, num_heads=H, scale=scale)

    # TODO(synk): for large B / large C, process Bt>1 batch elements per grid
    # step (lane-dense output slab) and single-buffer the constant weight
    # blocks to respect v7x's 64 MiB VMEM; at these shapes it is unnecessary.
    return pl.pallas_call(
        kernel,
        out_shape=jax.ShapeDtypeStruct((B, P, C), x.dtype),
        grid_spec=pltpu.PrefetchScalarGridSpec(
            num_scalar_prefetch=0,
            grid=(B,),
            in_specs=[
                pl.BlockSpec((1, P, C), lambda b: (b, 0, 0)),    # x
                pl.BlockSpec((H, C, hd), lambda b: (0, 0, 0)),   # wq (head-major)
                pl.BlockSpec((H, C, hd), lambda b: (0, 0, 0)),   # wk
                pl.BlockSpec((H, C, hd), lambda b: (0, 0, 0)),   # wv
                pl.BlockSpec((H, hd, C), lambda b: (0, 0, 0)),   # wproj
                pl.BlockSpec((1, C), lambda b: (0, 0)),          # bproj
            ],
            out_specs=pl.BlockSpec((1, P, C), lambda b: (b, 0, 0)),
        ),
        compiler_params=pltpu.CompilerParams(
            dimension_semantics=("parallel",),
            vmem_limit_bytes=32 * 1024 * 1024),
    )(x, wq_h, wk_h, wv_h, wp_h, bp2)


def mhsa_reference(x, wq, wk, wv, wp, bp, *, num_heads):
    """Pure-JAX f32 reference mirroring the PyTorch forward exactly."""
    B, P, C = x.shape
    hd = C // num_heads
    scale = float(hd) ** (-0.5)

    def split_heads(t):  # (B, P, C) -> (B, H, P, hd)
        return t.reshape(B, P, num_heads, hd).transpose(0, 2, 1, 3)

    q = split_heads(x @ wq) * scale
    k = split_heads(x @ wk)
    v = split_heads(x @ wv)
    attn = jnp.einsum('bhpd,bhqd->bhpq', q, k)
    attn = jax.nn.softmax(attn, axis=-1)
    ctx = jnp.einsum('bhpq,bhqd->bhpd', attn, v)
    ctx = ctx.transpose(0, 2, 1, 3).reshape(B, P, C)
    return ctx @ wp + bp


if __name__ == "__main__":
    # Small shapes consistent with the module: dim divisible by num_heads.
    B, P, C = 2, 16, 64
    num_heads = 8

    key = jax.random.PRNGKey(0)
    kx, kq, kk, kv, kp, kb = jax.random.split(key, 6)

    x = jax.random.normal(kx, (B, P, C), dtype=jnp.float32)

    # Deterministic synthetic parameters.  PyTorch Linear weight is (out, in);
    # stored here as (in, out) so y = x @ W.
    wq = jax.random.normal(kq, (C, C), dtype=jnp.float32) * 0.05
    wk = jax.random.normal(kk, (C, C), dtype=jnp.float32) * 0.05
    wv = jax.random.normal(kv, (C, C), dtype=jnp.float32) * 0.05
    wp = jax.random.normal(kp, (C, C), dtype=jnp.float32) * 0.05
    bp = jax.random.normal(kb, (C,), dtype=jnp.float32) * 0.05

    out = mhsa_pallas(x, wq, wk, wv, wp, bp, num_heads=num_heads)
    out = jax.block_until_ready(out)

    ref = mhsa_reference(x, wq, wk, wv, wp, bp, num_heads=num_heads)
    assert out.shape == (B, P, C)
    # Tolerance loosened vs. the f32 reference: MXU operands are bf16.
    assert jnp.allclose(out, ref, atol=2e-2, rtol=2e-2), "mismatch vs reference"

    print("KERNEL_OK")
</pallas_src>

<mosaic_0001>
module attributes {stable_mosaic.version = 11 : i64} {
  func.func @_mhsa_kernel(%arg0: i32, %arg1: memref<1x16x64xf32, #tpu.memory_space<vmem>>, %arg2: memref<8x64x8xbf16, #tpu.memory_space<vmem>>, %arg3: memref<8x64x8xbf16, #tpu.memory_space<vmem>>, %arg4: memref<8x64x8xbf16, #tpu.memory_space<vmem>>, %arg5: memref<8x8x64xbf16, #tpu.memory_space<vmem>>, %arg6: memref<1x64xf32, #tpu.memory_space<vmem>>, %arg7: memref<1x16x64xf32, #tpu.memory_space<vmem>>) attributes {dimension_semantics = [#tpu.dimension_semantics<parallel>], iteration_bounds = array<i64: 2>, scalar_prefetch = 0 : i64, scratch_operands = 0 : i64, tpu.core_type = #tpu.core_type<tc>, window_params = [{transform_indices = @transform_0, window_bounds = array<i64: 1, 16, 64>}, {pipeline_mode = #tpu.pipeline_mode<synchronous>, transform_indices = @transform_1, window_bounds = array<i64: 8, 64, 8>}, {pipeline_mode = #tpu.pipeline_mode<synchronous>, transform_indices = @transform_2, window_bounds = array<i64: 8, 64, 8>}, {pipeline_mode = #tpu.pipeline_mode<synchronous>, transform_indices = @transform_3, window_bounds = array<i64: 8, 64, 8>}, {pipeline_mode = #tpu.pipeline_mode<synchronous>, transform_indices = @transform_4, window_bounds = array<i64: 8, 8, 64>}, {pipeline_mode = #tpu.pipeline_mode<synchronous>, transform_indices = @transform_5, window_bounds = array<i64: 1, 64>}, {transform_indices = @transform_6, window_bounds = array<i64: 1, 16, 64>}]} {
    %c0 = arith.constant 0 : index
    %c0_0 = arith.constant 0 : index
    %c0_1 = arith.constant 0 : index
    %0 = vector.load %arg1[%c0, %c0_0, %c0_1] : memref<1x16x64xf32, #tpu.memory_space<vmem>>, vector<1x16x64xf32>
    %1 = vector.shape_cast %0 : vector<1x16x64xf32> to vector<16x64xf32>
    %2 = arith.truncf %1 : vector<16x64xf32> to vector<16x64xbf16>
    %3 = vector.shape_cast %2 : vector<16x64xbf16> to vector<1x16x64xbf16>
    %4 = vector.shape_cast %3 : vector<1x16x64xbf16> to vector<1x16x64xbf16>
    %5 = vector.broadcast %4 : vector<1x16x64xbf16> to vector<8x16x64xbf16>
    %c0_2 = arith.constant 0 : index
    %c0_3 = arith.constant 0 : index
    %c0_4 = arith.constant 0 : index
    %6 = vector.load %arg2[%c0_2, %c0_3, %c0_4] : memref<8x64x8xbf16, #tpu.memory_space<vmem>>, vector<8x64x8xbf16>
    "tpu.trace_start"() <{level = 10 : i32, message = "hpc,hcd->hpd"}> : () -> ()
    %cst = arith.constant dense<0.000000e+00> : vector<8x16x8xf32>
    %7 = tpu.matmul %5, %6, %cst {dimension_numbers = #tpu.dot_dimension_numbers<[2], [1], [1], [2], [0, 0, 0, 1, 1, 2], [0], [0]>} : vector<8x16x64xbf16>, vector<8x64x8xbf16>, vector<8x16x8xf32> -> vector<8x16x8xf32>
    "tpu.trace_stop"() : () -> ()
    %cst_5 = arith.constant 0.353553385 : f32
    %8 = vector.broadcast %cst_5 : f32 to vector<8x16x8xf32>
    %9 = arith.mulf %7, %8 : vector<8x16x8xf32>
    %c0_6 = arith.constant 0 : index
    %c0_7 = arith.constant 0 : index
    %c0_8 = arith.constant 0 : index
    %10 = vector.load %arg3[%c0_6, %c0_7, %c0_8] : memref<8x64x8xbf16, #tpu.memory_space<vmem>>, vector<8x64x8xbf16>
    "tpu.trace_start"() <{level = 10 : i32, message = "hpc,hcd->hpd"}> : () -> ()
    %cst_9 = arith.constant dense<0.000000e+00> : vector<8x16x8xf32>
    %11 = tpu.matmul %5, %10, %cst_9 {dimension_numbers = #tpu.dot_dimension_numbers<[2], [1], [1], [2], [0, 0, 0, 1, 1, 2], [0], [0]>} : vector<8x16x64xbf16>, vector<8x64x8xbf16>, vector<8x16x8xf32> -> vector<8x16x8xf32>
    "tpu.trace_stop"() : () -> ()
    %c0_10 = arith.constant 0 : index
    %c0_11 = arith.constant 0 : index
    %c0_12 = arith.constant 0 : index
    %12 = vector.load %arg4[%c0_10, %c0_11, %c0_12] : memref<8x64x8xbf16, #tpu.memory_space<vmem>>, vector<8x64x8xbf16>
    "tpu.trace_start"() <{level = 10 : i32, message = "hpc,hcd->hpd"}> : () -> ()
    %cst_13 = arith.constant dense<0.000000e+00> : vector<8x16x8xf32>
    %13 = tpu.matmul %5, %12, %cst_13 {dimension_numbers = #tpu.dot_dimension_numbers<[2], [1], [1], [2], [0, 0, 0, 1, 1, 2], [0], [0]>} : vector<8x16x64xbf16>, vector<8x64x8xbf16>, vector<8x16x8xf32> -> vector<8x16x8xf32>
    "tpu.trace_stop"() : () -> ()
    %14 = arith.truncf %9 : vector<8x16x8xf32> to vector<8x16x8xbf16>
    %15 = arith.truncf %11 : vector<8x16x8xf32> to vector<8x16x8xbf16>
    "tpu.trace_start"() <{level = 10 : i32, message = "hpd,hqd->hpq"}> : () -> ()
    %cst_14 = arith.constant dense<0.000000e+00> : vector<8x16x16xf32>
    %16 = tpu.matmul %14, %15, %cst_14 {dimension_numbers = #tpu.dot_dimension_numbers<[2], [2], [1], [1], [0, 0, 0, 1, 1, 1], [0], [0]>} : vector<8x16x8xbf16>, vector<8x16x8xbf16>, vector<8x16x16xf32> -> vector<8x16x16xf32>
    "tpu.trace_stop"() : () -> ()
    %cst_15 = arith.constant dense<0xFF800000> : vector<8x16xf32>
    %17 = vector.multi_reduction <maximumf>, %16, %cst_15 [2] : vector<8x16x16xf32> to vector<8x16xf32>
    %18 = vector.shape_cast %17 : vector<8x16xf32> to vector<8x16x1xf32>
    %19 = vector.broadcast %18 : vector<8x16x1xf32> to vector<8x16x16xf32>
    %20 = arith.subf %16, %19 : vector<8x16x16xf32>
    %21 = math.exp %20 : vector<8x16x16xf32>
    %cst_16 = arith.constant dense<0.000000e+00> : vector<8x16xf32>
    %22 = vector.multi_reduction <add>, %21, %cst_16 [2] : vector<8x16x16xf32> to vector<8x16xf32>
    %23 = vector.shape_cast %22 : vector<8x16xf32> to vector<8x16x1xf32>
    %24 = tpu.reciprocal %23 {approx = true} : vector<8x16x1xf32> -> vector<8x16x1xf32>
    %25 = vector.broadcast %24 : vector<8x16x1xf32> to vector<8x16x16xf32>
    %26 = arith.mulf %21, %25 : vector<8x16x16xf32>
    %27 = arith.truncf %26 : vector<8x16x16xf32> to vector<8x16x16xbf16>
    %28 = arith.truncf %13 : vector<8x16x8xf32> to vector<8x16x8xbf16>
    "tpu.trace_start"() <{level = 10 : i32, message = "hpq,hqd->hpd"}> : () -> ()
    %cst_17 = arith.constant dense<0.000000e+00> : vector<8x16x8xf32>
    %29 = tpu.matmul %27, %28, %cst_17 {dimension_numbers = #tpu.dot_dimension_numbers<[2], [1], [1], [2], [0, 0, 0, 1, 1, 2], [0], [0]>} : vector<8x16x16xbf16>, vector<8x16x8xbf16>, vector<8x16x8xf32> -> vector<8x16x8xf32>
    "tpu.trace_stop"() : () -> ()
    %30 = arith.truncf %29 : vector<8x16x8xf32> to vector<8x16x8xbf16>
    %c0_18 = arith.constant 0 : index
    %c0_19 = arith.constant 0 : index
    %c0_20 = arith.constant 0 : index
    %31 = vector.load %arg5[%c0_18, %c0_19, %c0_20] : memref<8x8x64xbf16, #tpu.memory_space<vmem>>, vector<8x8x64xbf16>
    "tpu.trace_start"() <{level = 10 : i32, message = "hpd,hdc->hpc"}> : () -> ()
    %cst_21 = arith.constant dense<0.000000e+00> : vector<8x16x64xf32>
    %32 = tpu.matmul %30, %31, %cst_21 {dimension_numbers = #tpu.dot_dimension_numbers<[2], [1], [1], [2], [0, 0, 0, 1, 1, 2], [0], [0]>} : vector<8x16x8xbf16>, vector<8x8x64xbf16>, vector<8x16x64xf32> -> vector<8x16x64xf32>
    "tpu.trace_stop"() : () -> ()
    %cst_22 = arith.constant dense<0.000000e+00> : vector<16x64xf32>
    %33 = vector.multi_reduction <add>, %32, %cst_22 [0] : vector<8x16x64xf32> to vector<16x64xf32>
    %c0_23 = arith.constant 0 : index
    %c0_24 = arith.constant 0 : index
    %34 = vector.load %arg6[%c0_23, %c0_24] : memref<1x64xf32, #tpu.memory_space<vmem>>, vector<1x64xf32>
    %35 = vector.broadcast %34 : vector<1x64xf32> to vector<16x64xf32>
    %36 = arith.addf %33, %35 : vector<16x64xf32>
    %c0_25 = arith.constant 0 : index
    %c0_26 = arith.constant 0 : index
    %c0_27 = arith.constant 0 : index
    %37 = vector.load %arg7[%c0_25, %c0_26, %c0_27] : memref<1x16x64xf32, #tpu.memory_space<vmem>>, vector<1x16x64xf32>
    %38 = vector.shape_cast %37 : vector<1x16x64xf32> to vector<16x64xf32>
    %39 = vector.shape_cast %36 : vector<16x64xf32> to vector<1x16x64xf32>
    tpu.vector_store %arg7[%c0_25, %c0_26, %c0_27], %39 {strides = array<i32>} : memref<1x16x64xf32, #tpu.memory_space<vmem>>, vector<1x16x64xf32>,
    return
  }
  func.func @transform_0(%arg0: i32) -> (i32, i32, i32) {
    %c0_i32 = arith.constant 0 : i32
    %c0_i32_0 = arith.constant 0 : i32
    %c0_i32_1 = arith.constant 0 : i32
    return %arg0, %c0_i32, %c0_i32_0 : i32, i32, i32
  }
  func.func @transform_1(%arg0: i32) -> (i32, i32, i32) {
    %c0_i32 = arith.constant 0 : i32
    %c0_i32_0 = arith.constant 0 : i32
    %c0_i32_1 = arith.constant 0 : i32
    %c0_i32_2 = arith.constant 0 : i32
    return %c0_i32, %c0_i32_0, %c0_i32_1 : i32, i32, i32
  }
  func.func @transform_2(%arg0: i32) -> (i32, i32, i32) {
    %c0_i32 = arith.constant 0 : i32
    %c0_i32_0 = arith.constant 0 : i32
    %c0_i32_1 = arith.constant 0 : i32
    %c0_i32_2 = arith.constant 0 : i32
    return %c0_i32, %c0_i32_0, %c0_i32_1 : i32, i32, i32
  }
  func.func @transform_3(%arg0: i32) -> (i32, i32, i32) {
    %c0_i32 = arith.constant 0 : i32
    %c0_i32_0 = arith.constant 0 : i32
    %c0_i32_1 = arith.constant 0 : i32
    %c0_i32_2 = arith.constant 0 : i32
    return %c0_i32, %c0_i32_0, %c0_i32_1 : i32, i32, i32
  }
  func.func @transform_4(%arg0: i32) -> (i32, i32, i32) {
    %c0_i32 = arith.constant 0 : i32
    %c0_i32_0 = arith.constant 0 : i32
    %c0_i32_1 = arith.constant 0 : i32
    %c0_i32_2 = arith.constant 0 : i32
    return %c0_i32, %c0_i32_0, %c0_i32_1 : i32, i32, i32
  }
  func.func @transform_5(%arg0: i32) -> (i32, i32) {
    %c0_i32 = arith.constant 0 : i32
    %c0_i32_0 = arith.constant 0 : i32
    %c0_i32_1 = arith.constant 0 : i32
    return %c0_i32, %c0_i32_0 : i32, i32
  }
  func.func @transform_6(%arg0: i32) -> (i32, i32, i32) {
    %c0_i32 = arith.constant 0 : i32
    %c0_i32_0 = arith.constant 0 : i32
    %c0_i32_1 = arith.constant 0 : i32
    return %arg0, %c0_i32, %c0_i32_0 : i32, i32, i32
  }
}

</mosaic_0001>

<bundles_post_ra>
// kernel: tpu_custom_call.1
= control target key start
LH: loop header
LB: loop body
LE: loop exit
PB: predicated region body
PF: predicated region fallthrough
CT: control target
= control target key end

     0   :  { %11 = vsyncpa [#allocation3], 0  ;;  %s5563_s0 = inlined_call_operand.vmem [shape: f32[2,16,64], index: 0, kind: input, shape index: {}]   ;;  %s5564_s1 = inlined_call_operand.vmem [shape: bf16[8,64,8], index: 1, kind: input, shape index: {}]   ;;  %s5565_s2 = inlined_call_operand.vmem [shape: bf16[8,64,8], index: 2, kind: input, shape index: {}]   ;;  %s5566_s3 = inlined_call_operand.vmem [shape: bf16[8,64,8], index: 3, kind: input, shape index: {}]   ;;  %s5567_s4 = inlined_call_operand.vmem [shape: bf16[8,8,64], index: 4, kind: input, shape index: {}]   ;;  %s5568_s5 = inlined_call_operand.vmem [shape: f32[1,64], index: 5, kind: input, shape index: {}]   ;;  %s5569_s6 = inlined_call_operand.hbm [shape: f32[2,16,64], index: 6, kind: output, shape index: {}]  }
   0x1   :  { %13 = vsyncpa [#allocation3 + $0x1], 0  ;;  %s4538_s21 = smov 0   ;;  %s4540_s22 = smov 0  }
   0x2   :  { %s4542_s23 = smov 0   ;;  %s4544_s24 = smov 0  }
   0x3 LB: > { %s4559_s25 = sadd.s32 4294967295, %s4496_s24   ;;  %s3474_s26 = sadd.s32 4294967294, %s4496_s24   ;;  %s4496_s24 = sphi %s4544_s24, %s5575_s24   ;;  %s4492_s23 = sphi %s4542_s23, %s5574_s23   ;;  %s4488_s22 = sphi %s4540_s22, %s5573_s22   ;;  %s4484_s21 = sphi %s4538_s21, %s5572_s21  }
   0x4   : > { %s4563_s27 = sadd.s32 1, %s4496_s24   ;;  %s157_s28 = sadd.s32 1, %s4492_s23 }
   0x5   : > { %s154_s29 = ssub.s32 %s4496_s24, %s4563_s27  ;;  %p167_p0 = scmp.ne.s32.totalorder %s4492_s23, %s4488_s22 }
   0x6   : > { %p155_p1 = scmp.eq.s32.totalorder %s154_s29, 0  ;;  %p168_p2 = scmp.eq.s32.totalorder %s4559_s25, 1 }
   0x7   : > { %p173_p3 = scmp.ne.s32.totalorder %s4488_s22, %s4484_s21  ;;  %p174_p4 = scmp.eq.s32.totalorder %s3474_s26, 1 }
   0x8   : > { %s4574_s30 = scalar_select %p155_p1, %s4492_s23, %s157_s28  }
   0x9   : > { %p4576_p5 = por %p168_p2, %p167_p0  ;;  %p4580_p6 = por %p174_p4, %p173_p3 }
   0xa   : > { %p3477_p7 = scmp.ge.s32.totalorder %s4496_s24, 1  ;;  %p215_p8 = scmp.lt.s32.totalorder %s4496_s24, 3 }
   0xc   : > { %p216_p9 = pnand %p3477_p7, %p215_p8 }
   0xd   : > { %p245_p10 = scmp.lt.s32.totalorder (!%p216_p9), %s4559_s25, 1  ;;  %s242_s12 = sand.u32 (!%p216_p9), 1, %s4488_s22  }
   0xe   : > { %219 = sbr.rel (%p216_p9) target bundleno = 1286 (0x506), region = 44  ;;  %s3478_s13 = sshll.u32 (!%p216_p9), %s242_s12, 4 }
   0xf   : > { %s3632_s16 = sshll.u32 (!%p216_p9), %s4559_s25, 8  ;;  %s4500_s29 = smov (!%p216_p9), [#allocation2]  }
  0x10   : > { %s5516_s26 = scalar_lea.hbm (!%p216_p9), %s5569_s6, %s3632_s16  ;;  %s4440_s9 = sshll.u32 (!%p216_p9), %s4500_s29, 4  ;;  %s4441_s9 = int_to_ptr.vmem [resolvable:$false] %s4440_s9 }
  0x13   : > { %v4276_v0 = vld [vmem:[%s5564_s1 + $0x18] sm:$0xff]   ;;  %v4498_v1 = vmov 0.0   ;;  %v4278_v3 = vld [vmem:[%s5564_s1 + $0x10] sm:$0xff]   ;;  %vm4499_vm0 = vmmov 0   ;;  %s246_s17 = scalar_select %p245_p10, %s4559_s25, 1  ;;  %v4280_v5 = vld [vmem:[%s5564_s1 + $0x8] sm:$0xff]  }
  0x14   : > { %3801 = vmatprep.subr.bf16.mxu0 %v4498_v1  ;;  %3813 = vmatprep.subr.bf16.mxu1 %v4498_v1  ;;  %v4277_v2 = vld [vmem:[%s5564_s1 + $0x38] sm:$0xff]   ;;  %v4279_v4 = vld [vmem:[%s5564_s1 + $0x30] sm:$0xff]   ;;  %v4281_v6 = vld [vmem:[%s5564_s1 + $0x28] sm:$0xff]   ;;  %vm342_vm1 = vcmask 523264   ;;  %vm2042_vm2 = vcmask 64512   ;;  %vm2419_vm3 = vcmask 130048  }
  0x15   : > { %3802 = vmatpush3.bf16.msra.mxu0 %v4276_v0  ;;  %3809 = vmatprep.mubr.msk.bf16.mxu0 %vm4499_vm0, %v4498_v1  ;;  %s3631_s20 = sshll.u32 %s246_s17, 4  ;;  %v4282_v7 = vld [vmem:[%s5564_s1] sm:$0xff]   ;;  %v4284_v12 = vld [vmem:[%s5564_s1 + $0x58] sm:$0xff]   ;;  %v4286_v14 = vld [vmem:[%s5564_s1 + $0x50] sm:$0xff]   ;;  %vm2983_vm4 = vcmask 1043456   ;;  %s244_s17 = scalar_lea.vmem [#allocation2], %s3478_s13 }
  0x16   : > { %3814 = vmatpush3.bf16.msra.mxu1 %v4277_v2  ;;  %3803 = vmatprep.subr.bf16.mxu0 %v4498_v1  ;;  %s249_s10 = scalar_lea.vmem %s5563_s0, %s3631_s20  ;;  %v4283_v10 = vld [vmem:[%s5564_s1 + $0x20] sm:$0xff]   ;;  %v4285_v13 = vld [vmem:[%s5564_s1 + $0x78] sm:$0xff]   ;;  %v4287_v15 = vld [vmem:[%s5564_s1 + $0x70] sm:$0xff]   ;;  %s3412_s18 = sshll.u32 %s244_s17, 4  ;;  %s5518_s18 = int_to_ptr.vmem [resolvable:$true] %s3412_s18 }
  0x17   : > { %3815 = vmatprep.subr.bf16.mxu1 %v4498_v1  ;;  %3821 = vmatprep.mubr.msk.bf16.mxu1 %vm4499_vm0, %v4498_v1  ;;  %v251_v8 = vld [vmem:[%s249_s10] sm:$0xff]  ;;  %v252_v9 = vld [vmem:[%s249_s10 + $0x8] sm:$0xff]  ;;  %v4292_v20 = vld [vmem:[%s5564_s1 + $0x98] sm:$0xff]   ;;  %s5523_s25 = scalar_lea.sflag [#allocation3], %s242_s12  ;;  %s4436_s28 = scalar_lea.vmem %s5518_s18, 256 }
  0x18   : > { %v4627_v11 = vpack.c.bf16 %v252_v9, %v251_v8  ;;  %v4288_v16 = vld [vmem:[%s5564_s1 + $0x48] sm:$0xff]   ;;  %v4290_v18 = vld [vmem:[%s5564_s1 + $0x40] sm:$0xff]   ;;  %v4293_v21 = vld [vmem:[%s5564_s1 + $0xb8] sm:$0xff]   ;;  %p4437_p11 = scmp.ne.s32.totalorder %s5518_s18, %s4436_s28  ;;  %s4442_s10 = scalar_lea.vmem %s4441_s9, 512 }
  0x19   : > { %3804 = vmatpush3.bf16.msra.mxu0 %v4278_v3  ;;  %v4289_v17 = vld [vmem:[%s5564_s1 + $0x68] sm:$0xff]   ;;  %v4291_v19 = vld [vmem:[%s5564_s1 + $0x60] sm:$0xff]   ;;  %v4294_v22 = vld [vmem:[%s5564_s1 + $0x90] sm:$0xff]   ;;  %p4443_p0 = scmp.lt.s32.totalorder %s5518_s18, %s4441_s9  ;;  %p4444_p1 = scmp.lt.s32.totalorder %s4442_s10, %s4436_s28 }
  0x1a   : > { %3816 = vmatpush3.bf16.msra.mxu1 %v4279_v4  ;;  %3805 = vmatprep.subr.bf16.mxu0 %v4498_v1  ;;  %v4295_v23 = vld [vmem:[%s5564_s1 + $0xb0] sm:$0xff]   ;;  %v4296_v24 = vld [vmem:[%s5564_s1 + $0x88] sm:$0xff]   ;;  %v4298_v26 = vld [vmem:[%s5564_s1 + $0x80] sm:$0xff]   ;;  %p4438_p12 = pnand %p4437_p11, %p4576_p5 }
  0x1b   : > { %3817 = vmatprep.subr.bf16.mxu1 %v4498_v1  ;;  %v4297_v25 = vld [vmem:[%s5564_s1 + $0xa8] sm:$0xff]   ;;  %v4299_v27 = vld [vmem:[%s5564_s1 + $0xa0] sm:$0xff]   ;;  %v4300_v28 = vld [vmem:[%s5564_s1 + $0xd8] sm:$0xff]   ;;  %p4445_p2 = por %p4444_p1, %p4443_p0 }
  0x1c   : > { %v4301_v29 = vld [vmem:[%s5564_s1 + $0xf8] sm:$0xff]   ;;  %v4302_v30 = vld [vmem:[%s5564_s1 + $0xd0] sm:$0xff]   ;;  %v4304_v32 = vld [vmem:[%s5564_s1 + $0xc8] sm:$0xff]   ;;  %p4439_p13 = pneg %p4438_p12 }
  0x1d   : > { %3806 = vmatpush3.bf16.msra.mxu0 %v4280_v5  ;;  %v4303_v31 = vld [vmem:[%s5564_s1 + $0xf0] sm:$0xff]   ;;  %v4305_v33 = vld [vmem:[%s5564_s1 + $0xe8] sm:$0xff]   ;;  %v4306_v34 = vld [vmem:[%s5564_s1 + $0xc0] sm:$0xff]  }
  0x1e   : > { %3818 = vmatpush3.bf16.msra.mxu1 %v4281_v6  ;;  %3807 = vmatprep.subr.bf16.mxu0 %v4498_v1  ;;  %v4307_v35 = vld [vmem:[%s5564_s1 + $0xe0] sm:$0xff]   ;;  %v4308_v36 = vld [vmem:[%s5565_s2 + $0x18] sm:$0xff]   ;;  %v4310_v38 = vld [vmem:[%s5565_s2 + $0x10] sm:$0xff]   ;;  %p4446_p3 = pnand %p4445_p2, %p4439_p13 }
  0x1f   : > { %3819 = vmatprep.subr.bf16.mxu1 %v4498_v1  ;;  %v4309_v37 = vld [vmem:[%s5565_s2 + $0x38] sm:$0xff]   ;;  %v4311_v39 = vld [vmem:[%s5565_s2 + $0x30] sm:$0xff]   ;;  %v4312_v40 = vld [vmem:[%s5565_s2 + $0x8] sm:$0xff]  }
  0x20   : > { %v4313_v41 = vld [vmem:[%s5565_s2 + $0x28] sm:$0xff]   ;;  %v4314_v42 = vld [vmem:[%s5565_s2] sm:$0xff]   ;;  %v4316_v44 = vld [vmem:[%s5565_s2 + $0x58] sm:$0xff]  }
  0x21   : > { %3808 = vmatpush3.bf16.msra.mxu0 %v4282_v7  ;;  %v4315_v43 = vld [vmem:[%s5565_s2 + $0x20] sm:$0xff]   ;;  %v4317_v45 = vld [vmem:[%s5565_s2 + $0x78] sm:$0xff]   ;;  %v4318_v46 = vld [vmem:[%s5565_s2 + $0x50] sm:$0xff]  }
  0x22   : > { %3820 = vmatpush3.bf16.msra.mxu1 %v4283_v10  ;;  %3825 = vmatprep.subr.bf16.mxu0 %v4498_v1  ;;  %v4319_v47 = vld [vmem:[%s5565_s2 + $0x70] sm:$0xff]   ;;  %v4320_v48 = vld [vmem:[%s5565_s2 + $0x48] sm:$0xff]   ;;  %v4322_v50 = vld [vmem:[%s5565_s2 + $0x40] sm:$0xff]  }
  0x23   : > { %3837 = vmatprep.subr.bf16.mxu1 %v4498_v1  ;;  %v4321_v49 = vld [vmem:[%s5565_s2 + $0x68] sm:$0xff]   ;;  %v4323_v51 = vld [vmem:[%s5565_s2 + $0x60] sm:$0xff]   ;;  %v4324_v52 = vld [vmem:[%s5565_s2 + $0x98] sm:$0xff]  }
  0x24   : > { %3810 = vmatmul.mubr.msk.bf16.vlgmr.msra.gmra.mxu0 %vm342_vm1, %v4627_v11  ;;  %v4325_v53 = vld [vmem:[%s5565_s2 + $0xb8] sm:$0xff]   ;;  %v4326_v54 = vld [vmem:[%s5565_s2 + $0x90] sm:$0xff]   ;;  %v4328_v56 = vld [vmem:[%s5565_s2 + $0x88] sm:$0xff]  }
  0x25   : > { %3822 = vmatmul.mubr.msk.bf16.vlgmr.msra.gmra.mxu1 %vm342_vm1, %v4627_v11  ;;  %3826 = vmatpush3.bf16.msra.mxu0 %v4284_v12  ;;  %v4327_v55 = vld [vmem:[%s5565_s2 + $0xb0] sm:$0xff]   ;;  %v4329_v57 = vld [vmem:[%s5565_s2 + $0xa8] sm:$0xff]   ;;  %v4330_v58 = vld [vmem:[%s5565_s2 + $0x80] sm:$0xff]  }
  0x26   : > { %3838 = vmatpush3.bf16.msra.mxu1 %v4285_v13  ;;  %3827 = vmatprep.subr.bf16.mxu0 %v4498_v1  ;;  %v4331_v59 = vld [vmem:[%s5565_s2 + $0xa0] sm:$0xff]   ;;  %v4332_v60 = vld [vmem:[%s5565_s2 + $0xd8] sm:$0xff]   ;;  %v4334_v62 = vld [vmem:[%s5565_s2 + $0xd0] sm:$0xff]  }
  0x27   : > { %3839 = vmatprep.subr.bf16.mxu1 %v4498_v1  ;;  %3833 = vmatprep.mubr.msk.bf16.mxu0 %vm4499_vm0, %v4498_v1  ;;  %v4333_v61 = vld [vmem:[%s5565_s2 + $0xf8] sm:$0xff]   ;;  %v4335_v63 = vld [vmem:[%s5565_s2 + $0xf0] sm:$0xff]   ;;  %v4336_v0 = vld [vmem:[%s5565_s2 + $0xc8] sm:$0xff]  }
  0x28   : > { %3845 = vmatprep.mubr.msk.bf16.mxu1 %vm4499_vm0, %v4498_v1  ;;  %v4337_v2 = vld [vmem:[%s5565_s2 + $0xe8] sm:$0xff]   ;;  %v4338_v3 = vld [vmem:[%s5565_s2 + $0xc0] sm:$0xff]   ;;  %v4340_v5 = vld [vmem:[%s5566_s3 + $0x18] sm:$0xff]  }
  0x29   : > { %3828 = vmatpush3.bf16.msra.mxu0 %v4286_v14  ;;  %v4339_v4 = vld [vmem:[%s5565_s2 + $0xe0] sm:$0xff]   ;;  %v4341_v6 = vld [vmem:[%s5566_s3 + $0x38] sm:$0xff]   ;;  %v4342_v7 = vld [vmem:[%s5566_s3 + $0x10] sm:$0xff]  }
  0x2a   : > { %3840 = vmatpush3.bf16.msra.mxu1 %v4287_v15  ;;  %3829 = vmatprep.subr.bf16.mxu0 %v4498_v1  ;;  %v4343_v8 = vld [vmem:[%s5566_s3 + $0x30] sm:$0xff]   ;;  %v4344_v9 = vld [vmem:[%s5566_s3 + $0x8] sm:$0xff]   ;;  %v4346_v12 = vld [vmem:[%s5566_s3] sm:$0xff]  }
  0x2b   : > { %3841 = vmatprep.subr.bf16.mxu1 %v4498_v1  ;;  %v4345_v10 = vld [vmem:[%s5566_s3 + $0x28] sm:$0xff]   ;;  %v4347_v13 = vld [vmem:[%s5566_s3 + $0x20] sm:$0xff]   ;;  %v4348_v14 = vld [vmem:[%s5566_s3 + $0x58] sm:$0xff]  }
  0x2c   : > { %v4349_v15 = vld [vmem:[%s5566_s3 + $0x78] sm:$0xff]  }
  0x2d   : > { %3830 = vmatpush3.bf16.msra.mxu0 %v4288_v16  ;;  %v4350_v16 = vld [vmem:[%s5566_s3 + $0x50] sm:$0xff]  }
  0x2e   : > { %3842 = vmatpush3.bf16.msra.mxu1 %v4289_v17  ;;  %3831 = vmatprep.subr.bf16.mxu0 %v4498_v1  ;;  %v4351_v17 = vld [vmem:[%s5566_s3 + $0x70] sm:$0xff]  }
  0x2f   : > { %3843 = vmatprep.subr.bf16.mxu1 %v4498_v1 }
  0x31   : > { %3832 = vmatpush3.bf16.msra.mxu0 %v4290_v18  ;;  %v4352_v18 = vld [vmem:[%s5566_s3 + $0x48] sm:$0xff]  }
  0x32   : > { %3844 = vmatpush3.bf16.msra.mxu1 %v4291_v19  ;;  %3849 = vmatprep.subr.bf16.mxu0 %v4498_v1  ;;  %v4353_v19 = vld [vmem:[%s5566_s3 + $0x68] sm:$0xff]  }
  0x33   : > { %3861 = vmatprep.subr.bf16.mxu1 %v4498_v1 }
  0x34   : > { %3834 = vmatmul.mubr.msk.bf16.vlgmr.msra.gmra.mxu0 %vm342_vm1, %v4627_v11 }
  0x35   : > { %3846 = vmatmul.mubr.msk.bf16.vlgmr.msra.gmra.mxu1 %vm342_vm1, %v4627_v11  ;;  %3850 = vmatpush3.bf16.msra.mxu0 %v4292_v20  ;;  %v4354_v20 = vld [vmem:[%s5566_s3 + $0x40] sm:$0xff]  }
  0x36   : > { %3862 = vmatpush3.bf16.msra.mxu1 %v4293_v21  ;;  %3851 = vmatprep.subr.bf16.mxu0 %v4498_v1  ;;  %v4355_v21 = vld [vmem:[%s5566_s3 + $0x60] sm:$0xff]  }
  0x37   : > { %3863 = vmatprep.subr.bf16.mxu1 %v4498_v1  ;;  %3857 = vmatprep.mubr.msk.bf16.mxu0 %vm4499_vm0, %v4498_v1 }
  0x38   : > { %3869 = vmatprep.mubr.msk.bf16.mxu1 %vm4499_vm0, %v4498_v1 }
  0x39   : > { %3852 = vmatpush3.bf16.msra.mxu0 %v4294_v22  ;;  %v4356_v22 = vld [vmem:[%s5566_s3 + $0x98] sm:$0xff]  }
  0x3a   : > { %3864 = vmatpush3.bf16.msra.mxu1 %v4295_v23  ;;  %3853 = vmatprep.subr.bf16.mxu0 %v4498_v1  ;;  %v4357_v23 = vld [vmem:[%s5566_s3 + $0xb8] sm:$0xff]  }
  0x3b   : > { %3865 = vmatprep.subr.bf16.mxu1 %v4498_v1 }
  0x3d   : > { %3854 = vmatpush3.bf16.msra.mxu0 %v4296_v24  ;;  %v4358_v24 = vld [vmem:[%s5566_s3 + $0x90] sm:$0xff]  }
  0x3e   : > { %3866 = vmatpush3.bf16.msra.mxu1 %v4297_v25  ;;  %3855 = vmatprep.subr.bf16.mxu0 %v4498_v1  ;;  %v4359_v25 = vld [vmem:[%s5566_s3 + $0xb0] sm:$0xff]  }
  0x3f   : > { %3867 = vmatprep.subr.bf16.mxu1 %v4498_v1 }
  0x41   : > { %3856 = vmatpush3.bf16.msra.mxu0 %v4298_v26  ;;  %v4360_v26 = vld [vmem:[%s5566_s3 + $0x88] sm:$0xff]  }
  0x42   : > { %3868 = vmatpush3.bf16.msra.mxu1 %v4299_v27  ;;  %3873 = vmatprep.subr.bf16.mxu0 %v4498_v1  ;;  %v4361_v27 = vld [vmem:[%s5566_s3 + $0xa8] sm:$0xff]  }
  0x43   : > { %3885 = vmatprep.subr.bf16.mxu1 %v4498_v1 }
  0x44   : > { %3858 = vmatmul.mubr.msk.bf16.vlgmr.msra.gmra.mxu0 %vm342_vm1, %v4627_v11 }
  0x45   : > { %3870 = vmatmul.mubr.msk.bf16.vlgmr.msra.gmra.mxu1 %vm342_vm1, %v4627_v11  ;;  %3874 = vmatpush3.bf16.msra.mxu0 %v4300_v28  ;;  %v4362_v28 = vld [vmem:[%s5566_s3 + $0x80] sm:$0xff]  }
  0x46   : > { %3886 = vmatpush3.bf16.msra.mxu1 %v4301_v29  ;;  %3875 = vmatprep.subr.bf16.mxu0 %v4498_v1  ;;  %v4363_v29 = vld [vmem:[%s5566_s3 + $0xa0] sm:$0xff]  }
  0x47   : > { %3887 = vmatprep.subr.bf16.mxu1 %v4498_v1  ;;  %3881 = vmatprep.mubr.msk.bf16.mxu0 %vm4499_vm0, %v4498_v1 }
  0x48   : > { %3893 = vmatprep.mubr.msk.bf16.mxu1 %vm4499_vm0, %v4498_v1 }
  0x49   : > { %3876 = vmatpush3.bf16.msra.mxu0 %v4302_v30  ;;  %v4364_v30 = vld [vmem:[%s5566_s3 + $0xd8] sm:$0xff]  }
  0x4a   : > { %3888 = vmatpush3.bf16.msra.mxu1 %v4303_v31  ;;  %3877 = vmatprep.subr.bf16.mxu0 %v4498_v1  ;;  %v4365_v31 = vld [vmem:[%s5566_s3 + $0xf8] sm:$0xff]  }
  0x4b   : > { %3889 = vmatprep.subr.bf16.mxu1 %v4498_v1 }
  0x4d   : > { %3878 = vmatpush3.bf16.msra.mxu0 %v4304_v32  ;;  %v4366_v32 = vld [vmem:[%s5566_s3 + $0xd0] sm:$0xff]  }
  0x4e   : > { %3890 = vmatpush3.bf16.msra.mxu1 %v4305_v33  ;;  %3879 = vmatprep.subr.bf16.mxu0 %v4498_v1  ;;  %v4367_v33 = vld [vmem:[%s5566_s3 + $0xf0] sm:$0xff]  }
  0x4f   : > { %3891 = vmatprep.subr.bf16.mxu1 %v4498_v1 }
  0x51   : > { %3880 = vmatpush3.bf16.msra.mxu0 %v4306_v34  ;;  %v4368_v34 = vld [vmem:[%s5566_s3 + $0xc8] sm:$0xff]  }
  0x52   : > { %3892 = vmatpush3.bf16.msra.mxu1 %v4307_v35  ;;  %3897 = vmatprep.subr.bf16.mxu0 %v4498_v1  ;;  %v4369_v35 = vld [vmem:[%s5566_s3 + $0xe8] sm:$0xff]  }
  0x53   : > { %3909 = vmatprep.subr.bf16.mxu1 %v4498_v1 }
  0x54   : > { %3882 = vmatmul.mubr.msk.bf16.vlgmr.msra.gmra.mxu0 %vm342_vm1, %v4627_v11 }
  0x55   : > { %3894 = vmatmul.mubr.msk.bf16.vlgmr.msra.gmra.mxu1 %vm342_vm1, %v4627_v11  ;;  %3898 = vmatpush3.bf16.msra.mxu0 %v4308_v36  ;;  %v4370_v36 = vld [vmem:[%s5566_s3 + $0xc0] sm:$0xff]  }
  0x56   : > { %3910 = vmatpush3.bf16.msra.mxu1 %v4309_v37  ;;  %3899 = vmatprep.subr.bf16.mxu0 %v4498_v1  ;;  %v4371_v37 = vld [vmem:[%s5566_s3 + $0xe0] sm:$0xff]  }
  0x57   : > { %3911 = vmatprep.subr.bf16.mxu1 %v4498_v1  ;;  %3905 = vmatprep.mubr.msk.bf16.mxu0 %vm4499_vm0, %v4498_v1 }
  0x58   : > { %3917 = vmatprep.mubr.msk.bf16.mxu1 %vm4499_vm0, %v4498_v1 }
  0x59   : > { %3900 = vmatpush3.bf16.msra.mxu0 %v4310_v38 }
  0x5a   : > { %3912 = vmatpush3.bf16.msra.mxu1 %v4311_v39  ;;  %3901 = vmatprep.subr.bf16.mxu0 %v4498_v1 }
  0x5b   : > { %3913 = vmatprep.subr.bf16.mxu1 %v4498_v1 }
  0x5d   : > { %3902 = vmatpush3.bf16.msra.mxu0 %v4312_v40 }
  0x5e   : > { %3914 = vmatpush3.bf16.msra.mxu1 %v4313_v41  ;;  %3903 = vmatprep.subr.bf16.mxu0 %v4498_v1 }
  0x5f   : > { %3915 = vmatprep.subr.bf16.mxu1 %v4498_v1 }
  0x61   : > { %3904 = vmatpush3.bf16.msra.mxu0 %v4314_v42 }
  0x62   : > { %3916 = vmatpush3.bf16.msra.mxu1 %v4315_v43  ;;  %3921 = vmatprep.subr.bf16.mxu0 %v4498_v1 }
  0x63   : > { %3933 = vmatprep.subr.bf16.mxu1 %v4498_v1 }
  0x64   : > { %3906 = vmatmul.mubr.msk.bf16.vlgmr.msra.gmra.mxu0 %vm342_vm1, %v4627_v11 }
  0x65   : > { %3918 = vmatmul.mubr.msk.bf16.vlgmr.msra.gmra.mxu1 %vm342_vm1, %v4627_v11  ;;  %3922 = vmatpush3.bf16.msra.mxu0 %v4316_v44 }
  0x66   : > { %3934 = vmatpush3.bf16.msra.mxu1 %v4317_v45  ;;  %3923 = vmatprep.subr.bf16.mxu0 %v4498_v1 }
  0x67   : > { %3935 = vmatprep.subr.bf16.mxu1 %v4498_v1  ;;  %3929 = vmatprep.mubr.msk.bf16.mxu0 %vm4499_vm0, %v4498_v1 }
  0x68   : > { %3941 = vmatprep.mubr.msk.bf16.mxu1 %vm4499_vm0, %v4498_v1 }
  0x69   : > { %3924 = vmatpush3.bf16.msra.mxu0 %v4318_v46 }
  0x6a   : > { %3936 = vmatpush3.bf16.msra.mxu1 %v4319_v47  ;;  %3925 = vmatprep.subr.bf16.mxu0 %v4498_v1 }
  0x6b   : > { %3937 = vmatprep.subr.bf16.mxu1 %v4498_v1 }
  0x6d   : > { %3926 = vmatpush3.bf16.msra.mxu0 %v4320_v48 }
  0x6e   : > { %3938 = vmatpush3.bf16.msra.mxu1 %v4321_v49  ;;  %3927 = vmatprep.subr.bf16.mxu0 %v4498_v1 }
  0x6f   : > { %3939 = vmatprep.subr.bf16.mxu1 %v4498_v1 }
  0x71   : > { %3928 = vmatpush3.bf16.msra.mxu0 %v4322_v50 }
  0x72   : > { %3940 = vmatpush3.bf16.msra.mxu1 %v4323_v51  ;;  %3945 = vmatprep.subr.bf16.mxu0 %v4498_v1 }
  0x73   : > { %3957 = vmatprep.subr.bf16.mxu1 %v4498_v1 }
  0x74   : > { %3930 = vmatmul.mubr.msk.bf16.vlgmr.msra.gmra.mxu0 %vm342_vm1, %v4627_v11 }
  0x75   : > { %3942 = vmatmul.mubr.msk.bf16.vlgmr.msra.gmra.mxu1 %vm342_vm1, %v4627_v11  ;;  %3946 = vmatpush3.bf16.msra.mxu0 %v4324_v52 }
  0x76   : > { %3958 = vmatpush3.bf16.msra.mxu1 %v4325_v53  ;;  %3947 = vmatprep.subr.bf16.mxu0 %v4498_v1 }
  0x77   : > { %3959 = vmatprep.subr.bf16.mxu1 %v4498_v1  ;;  %3953 = vmatprep.mubr.msk.bf16.mxu0 %vm4499_vm0, %v4498_v1 }
  0x78   : > { %3965 = vmatprep.mubr.msk.bf16.mxu1 %vm4499_vm0, %v4498_v1 }
  0x79   : > { %3948 = vmatpush3.bf16.msra.mxu0 %v4326_v54 }
  0x7a   : > { %3960 = vmatpush3.bf16.msra.mxu1 %v4327_v55  ;;  %3949 = vmatprep.subr.bf16.mxu0 %v4498_v1 }
  0x7b   : > { %3961 = vmatprep.subr.bf16.mxu1 %v4498_v1 }
  0x7d   : > { %3950 = vmatpush3.bf16.msra.mxu0 %v4328_v56 }
  0x7e   : > { %3962 = vmatpush3.bf16.msra.mxu1 %v4329_v57  ;;  %3951 = vmatprep.subr.bf16.mxu0 %v4498_v1 }
  0x7f   : > { %3963 = vmatprep.subr.bf16.mxu1 %v4498_v1 }
  0x81   : > { %3952 = vmatpush3.bf16.msra.mxu0 %v4330_v58 }
  0x82   : > { %3964 = vmatpush3.bf16.msra.mxu1 %v4331_v59  ;;  %3969 = vmatprep.subr.bf16.mxu0 %v4498_v1 }
  0x83   : > { %3981 = vmatprep.subr.bf16.mxu1 %v4498_v1 }
  0x84   : > { %3954 = vmatmul.mubr.msk.bf16.vlgmr.msra.gmra.mxu0 %vm342_vm1, %v4627_v11 }
  0x85   : > { %3966 = vmatmul.mubr.msk.bf16.vlgmr.msra.gmra.mxu1 %vm342_vm1, %v4627_v11  ;;  %3970 = vmatpush3.bf16.msra.mxu0 %v4332_v60 }
  0x86   : > { %3982 = vmatpush3.bf16.msra.mxu1 %v4333_v61  ;;  %3971 = vmatprep.subr.bf16.mxu0 %v4498_v1 }
  0x87   : > { %3983 = vmatprep.subr.bf16.mxu1 %v4498_v1  ;;  %3977 = vmatprep.mubr.msk.bf16.mxu0 %vm4499_vm0, %v4498_v1 }
  0x88   : > { %3989 = vmatprep.mubr.msk.bf16.mxu1 %vm4499_vm0, %v4498_v1 }
  0x89   : > { %3972 = vmatpush3.bf16.msra.mxu0 %v4334_v62 }
  0x8a   : > { %3984 = vmatpush3.bf16.msra.mxu1 %v4335_v63  ;;  %3973 = vmatprep.subr.bf16.mxu0 %v4498_v1 }
  0x8b   : > { %3985 = vmatprep.subr.bf16.mxu1 %v4498_v1 }
  0x8d   : > { %3974 = vmatpush3.bf16.msra.mxu0 %v4336_v0 }
  0x8e   : > { %3986 = vmatpush3.bf16.msra.mxu1 %v4337_v2  ;;  %3975 = vmatprep.subr.bf16.mxu0 %v4498_v1 }
  0x8f   : > { %3987 = vmatprep.subr.bf16.mxu1 %v4498_v1 }
  0x91   : > { %3976 = vmatpush3.bf16.msra.mxu0 %v4338_v3 }
  0x92   : > { %3988 = vmatpush3.bf16.msra.mxu1 %v4339_v4  ;;  %3993 = vmatprep.subr.bf16.mxu0 %v4498_v1 }
  0x93   : > { %4005 = vmatprep.subr.bf16.mxu1 %v4498_v1 }
  0x94   : > { %3978 = vmatmul.mubr.msk.bf16.vlgmr.msra.gmra.mxu0 %vm342_vm1, %v4627_v11 }
  0x95   : > { %3990 = vmatmul.mubr.msk.bf16.vlgmr.msra.gmra.mxu1 %vm342_vm1, %v4627_v11  ;;  %3994 = vmatpush3.bf16.msra.mxu0 %v4340_v5 }
  0x96   : > { %4006 = vmatpush3.bf16.msra.mxu1 %v4341_v6  ;;  %3995 = vmatprep.subr.bf16.mxu0 %v4498_v1 }
  0x97   : > { %4007 = vmatprep.subr.bf16.mxu1 %v4498_v1  ;;  %4001 = vmatprep.mubr.msk.bf16.mxu0 %vm4499_vm0, %v4498_v1 }
  0x98   : > { %4013 = vmatprep.mubr.msk.bf16.mxu1 %vm4499_vm0, %v4498_v1 }
  0x99   : > { %3996 = vmatpush3.bf16.msra.mxu0 %v4342_v7 }
  0x9a   : > { %4008 = vmatpush3.bf16.msra.mxu1 %v4343_v8  ;;  %3997 = vmatprep.subr.bf16.mxu0 %v4498_v1 }
  0x9b   : > { %4009 = vmatprep.subr.bf16.mxu1 %v4498_v1 }
  0x9d   : > { %3998 = vmatpush3.bf16.msra.mxu0 %v4344_v9 }
  0x9e   : > { %4010 = vmatpush3.bf16.msra.mxu1 %v4345_v10  ;;  %3999 = vmatprep.subr.bf16.mxu0 %v4498_v1 }
  0x9f   : > { %4011 = vmatprep.subr.bf16.mxu1 %v4498_v1 }
  0xa1   : > { %4000 = vmatpush3.bf16.msra.mxu0 %v4346_v12 }
  0xa2   : > { %4012 = vmatpush3.bf16.msra.mxu1 %v4347_v13  ;;  %4017 = vmatprep.subr.bf16.mxu0 %v4498_v1 }
  0xa3   : > { %4029 = vmatprep.subr.bf16.mxu1 %v4498_v1 }
  0xa4   : > { %4002 = vmatmul.mubr.msk.bf16.vlgmr.msra.gmra.mxu0 %vm342_vm1, %v4627_v11 }
  0xa5   : > { %4014 = vmatmul.mubr.msk.bf16.vlgmr.msra.gmra.mxu1 %vm342_vm1, %v4627_v11  ;;  %4018 = vmatpush3.bf16.msra.mxu0 %v4348_v14 }
  0xa6   : > { %4030 = vmatpush3.bf16.msra.mxu1 %v4349_v15  ;;  %4019 = vmatprep.subr.bf16.mxu0 %v4498_v1 }
  0xa7   : > { %4031 = vmatprep.subr.bf16.mxu1 %v4498_v1  ;;  %4025 = vmatprep.mubr.msk.bf16.mxu0 %vm4499_vm0, %v4498_v1 }
  0xa8   : > { %4037 = vmatprep.mubr.msk.bf16.mxu1 %vm4499_vm0, %v4498_v1 }
  0xa9   : > { %4020 = vmatpush3.bf16.msra.mxu0 %v4350_v16 }
  0xaa   : > { %4032 = vmatpush3.bf16.msra.mxu1 %v4351_v17  ;;  %4021 = vmatprep.subr.bf16.mxu0 %v4498_v1 }
  0xab   : > { %4033 = vmatprep.subr.bf16.mxu1 %v4498_v1 }
  0xad   : > { %4022 = vmatpush3.bf16.msra.mxu0 %v4352_v18 }
  0xae   : > { %4034 = vmatpush3.bf16.msra.mxu1 %v4353_v19  ;;  %4023 = vmatprep.subr.bf16.mxu0 %v4498_v1 }
  0xaf   : > { %4035 = vmatprep.subr.bf16.mxu1 %v4498_v1 }
  0xb1   : > { %4024 = vmatpush3.bf16.msra.mxu0 %v4354_v20 }
  0xb2   : > { %4036 = vmatpush3.bf16.msra.mxu1 %v4355_v21  ;;  %4041 = vmatprep.subr.bf16.mxu0 %v4498_v1 }
  0xb3   : > { %4053 = vmatprep.subr.bf16.mxu1 %v4498_v1 }
  0xb4   : > { %4026 = vmatmul.mubr.msk.bf16.vlgmr.msra.gmra.mxu0 %vm342_vm1, %v4627_v11 }
  0xb5   : > { %4038 = vmatmul.mubr.msk.bf16.vlgmr.msra.gmra.mxu1 %vm342_vm1, %v4627_v11  ;;  %4042 = vmatpush3.bf16.msra.mxu0 %v4356_v22 }
  0xb6   : > { %4054 = vmatpush3.bf16.msra.mxu1 %v4357_v23  ;;  %4043 = vmatprep.subr.bf16.mxu0 %v4498_v1 }
  0xb7   : > { %4055 = vmatprep.subr.bf16.mxu1 %v4498_v1  ;;  %4049 = vmatprep.mubr.msk.bf16.mxu0 %vm4499_vm0, %v4498_v1 }
  0xb8   : > { %4061 = vmatprep.mubr.msk.bf16.mxu1 %vm4499_vm0, %v4498_v1 }
  0xb9   : > { %4044 = vmatpush3.bf16.msra.mxu0 %v4358_v24 }
  0xba   : > { %4056 = vmatpush3.bf16.msra.mxu1 %v4359_v25  ;;  %4045 = vmatprep.subr.bf16.mxu0 %v4498_v1 }
  0xbb   : > { %4057 = vmatprep.subr.bf16.mxu1 %v4498_v1 }
  0xbd   : > { %4046 = vmatpush3.bf16.msra.mxu0 %v4360_v26 }
  0xbe   : > { %4058 = vmatpush3.bf16.msra.mxu1 %v4361_v27  ;;  %4047 = vmatprep.subr.bf16.mxu0 %v4498_v1 }
  0xbf   : > { %4059 = vmatprep.subr.bf16.mxu1 %v4498_v1 }
  0xc1   : > { %4048 = vmatpush3.bf16.msra.mxu0 %v4362_v28 }
  0xc2   : > { %4060 = vmatpush3.bf16.msra.mxu1 %v4363_v29  ;;  %4065 = vmatprep.subr.bf16.mxu0 %v4498_v1 }
  0xc3   : > { %4077 = vmatprep.subr.bf16.mxu1 %v4498_v1 }
  0xc4   : > { %4050 = vmatmul.mubr.msk.bf16.vlgmr.msra.gmra.mxu0 %vm342_vm1, %v4627_v11 }
  0xc5   : > { %4062 = vmatmul.mubr.msk.bf16.vlgmr.msra.gmra.mxu1 %vm342_vm1, %v4627_v11  ;;  %4066 = vmatpush3.bf16.msra.mxu0 %v4364_v30 }
  0xc6   : > { %4078 = vmatpush3.bf16.msra.mxu1 %v4365_v31  ;;  %4067 = vmatprep.subr.bf16.mxu0 %v4498_v1 }
  0xc7   : > { %4079 = vmatprep.subr.bf16.mxu1 %v4498_v1  ;;  %4073 = vmatprep.mubr.msk.bf16.mxu0 %vm4499_vm0, %v4498_v1 }
  0xc8   : > { %4085 = vmatprep.mubr.msk.bf16.mxu1 %vm4499_vm0, %v4498_v1 }
  0xc9   : > { %4068 = vmatpush3.bf16.msra.mxu0 %v4366_v32 }
  0xca   : > { %4080 = vmatpush3.bf16.msra.mxu1 %v4367_v33  ;;  %4069 = vmatprep.subr.bf16.mxu0 %v4498_v1 }
  0xcb   : > { %4081 = vmatprep.subr.bf16.mxu1 %v4498_v1 }
  0xcd   : > { %4070 = vmatpush3.bf16.msra.mxu0 %v4368_v34 }
  0xce   : > { %4082 = vmatpush3.bf16.msra.mxu1 %v4369_v35  ;;  %4071 = vmatprep.subr.bf16.mxu0 %v4498_v1 }
  0xcf   : > { %4083 = vmatprep.subr.bf16.mxu1 %v4498_v1 }
  0xd1   : > { %4072 = vmatpush3.bf16.msra.mxu0 %v4370_v36 }
  0xd2   : > { %4084 = vmatpush3.bf16.msra.mxu1 %v4371_v37  ;;  %4089 = vmatprep.subr.bf16.mxu0 %v4498_v1 }
  0xd3   : > { %4095 = vmatprep.subr.bf16.mxu1 %v4498_v1 }
  0xd4   : > { %4074 = vmatmul.mubr.msk.bf16.vlgmr.msra.gmra.mxu0 %vm342_vm1, %v4627_v11 }
  0xd5   : > { %4086 = vmatmul.mubr.msk.bf16.vlgmr.msra.gmra.mxu1 %vm342_vm1, %v4627_v11  ;;  %4091 = vmatprep.mubr.msk.bf16.mxu0 %vm4499_vm0, %v4498_v1 }
  0xd6   : > { %4097 = vmatprep.mubr.msk.bf16.mxu1 %vm4499_vm0, %v4498_v1 }
  0xe4   : > { %v380_v38 = vpop.f32.mrf.mxu0 }
  0xe5   : > { %v445_v39 = vpop.f32.mrf.mxu1  ;;  %v5081_v44 = vmul.f32 0.35355338, %v380_v38 }
  0xe6   : > { %v3811_v40 = vpop.f32.mrf.mxu0  ;;  %v5079_v42 = vmul.f32 0.35355338, %v445_v39 }
  0xe7   : > { %v3823_v41 = vpop.f32.mrf.mxu1 }
  0xe8   : > { %v383_v43 = vpop.f32.mrf.mxu0 }
  0xe9   : > { %v5083_v45 = vmul.f32 0.35355338, %v383_v43  ;;  %v448_v46 = vpop.f32.mrf.mxu1 }
  0xea   : > { %v5085_v47 = vmul.f32 0.35355338, %v448_v46  ;;  %v3812_v11 = vpop.f32.mrf.mxu0 }
  0xeb   : > { %v2026_v48 = vpack.c.bf16 %v5083_v45, %v5081_v44  ;;  %v3824_v49 = vpop.f32.mrf.mxu1 }
  0xec   : > { %v2027_v50 = vpack.c.bf16 %v5085_v47, %v5079_v42 }
  0xf4   : > { %v510_v51 = vpop.f32.mrf.mxu0 }
  0xf5   : > { %v575_v52 = vpop.f32.mrf.mxu1  ;;  %v5093_v57 = vmul.f32 0.35355338, %v510_v51 }
  0xf6   : > { %v3835_v53 = vpop.f32.mrf.mxu0  ;;  %v5091_v55 = vmul.f32 0.35355338, %v575_v52 }
  0xf7   : > { %v3847_v54 = vpop.f32.mrf.mxu1 }
  0xf8   : > { %v513_v56 = vpop.f32.mrf.mxu0 }
  0xf9   : > { %v5095_v58 = vmul.f32 0.35355338, %v513_v56  ;;  %v578_v59 = vpop.f32.mrf.mxu1 }
  0xfa   : > { %v5097_v60 = vmul.f32 0.35355338, %v578_v59  ;;  %v3836_v61 = vpop.f32.mrf.mxu0 }
  0xfb   : > { %v2028_v62 = vpack.c.bf16 %v5095_v58, %v5093_v57  ;;  %v3848_v63 = vpop.f32.mrf.mxu1 }
  0xfc   : > { %v2029_v0 = vpack.c.bf16 %v5097_v60, %v5091_v55 }
 0x104   : > { %v640_v2 = vpop.f32.mrf.mxu0 }
 0x105   : > { %v705_v3 = vpop.f32.mrf.mxu1  ;;  %v5105_v8 = vmul.f32 0.35355338, %v640_v2 }
 0x106   : > { %v3859_v4 = vpop.f32.mrf.mxu0  ;;  %v5103_v6 = vmul.f32 0.35355338, %v705_v3 }
 0x107   : > { %v3871_v5 = vpop.f32.mrf.mxu1 }
 0x108   : > { %v643_v7 = vpop.f32.mrf.mxu0 }
 0x109   : > { %v5107_v9 = vmul.f32 0.35355338, %v643_v7  ;;  %v708_v10 = vpop.f32.mrf.mxu1 }
 0x10a   : > { %v5109_v12 = vmul.f32 0.35355338, %v708_v10  ;;  %v3860_v13 = vpop.f32.mrf.mxu0 }
 0x10b   : > { %v2030_v14 = vpack.c.bf16 %v5107_v9, %v5105_v8  ;;  %v3872_v15 = vpop.f32.mrf.mxu1 }
 0x10c   : > { %v2031_v16 = vpack.c.bf16 %v5109_v12, %v5103_v6 }
 0x114   : > { %v770_v17 = vpop.f32.mrf.mxu0 }
 0x115   : > { %v835_v18 = vpop.f32.mrf.mxu1  ;;  %v5117_v23 = vmul.f32 0.35355338, %v770_v17 }
 0x116   : > { %v3883_v19 = vpop.f32.mrf.mxu0  ;;  %v5115_v21 = vmul.f32 0.35355338, %v835_v18 }
 0x117   : > { %v3895_v20 = vpop.f32.mrf.mxu1 }
 0x118   : > { %v773_v22 = vpop.f32.mrf.mxu0 }
 0x119   : > { %v5119_v24 = vmul.f32 0.35355338, %v773_v22  ;;  %v838_v25 = vpop.f32.mrf.mxu1 }
 0x11a   : > { %v5121_v26 = vmul.f32 0.35355338, %v838_v25  ;;  %v3884_v27 = vpop.f32.mrf.mxu0 }
 0x11b   : > { %v2032_v28 = vpack.c.bf16 %v5119_v24, %v5117_v23  ;;  %v3896_v29 = vpop.f32.mrf.mxu1 }
 0x11c   : > { %v2033_v30 = vpack.c.bf16 %v5121_v26, %v5115_v21 }
 0x124   : > { %v980_v31 = vpop.f32.mrf.mxu0 }
 0x125   : > { %v1045_v32 = vpop.f32.mrf.mxu1 }
 0x126   : > { %v3907_v33 = vpop.f32.mrf.mxu0 }
 0x127   : > { %v3919_v34 = vpop.f32.mrf.mxu1 }
 0x128   : > { %v983_v35 = vpop.f32.mrf.mxu0 }
 0x129   : > { %v2034_v36 = vpack.c.bf16 %v983_v35, %v980_v31  ;;  %v1048_v37 = vpop.f32.mrf.mxu1 }
 0x12a   : > { %v2035_v38 = vpack.c.bf16 %v1048_v37, %v1045_v32  ;;  %v3908_v39 = vpop.f32.mrf.mxu0 }
 0x12b   : > { %v2047_v40 = vsel %vm2042_vm2, %v2034_v36, 0  ;;  %v3920_v41 = vpop.f32.mrf.mxu1 }
 0x12c   : > { %v2094_v42 = vsel %vm2042_vm2, %v2035_v38, 0  ;;  %4090 = vmatpush3.bf16.xpose.msra.mxu0 %v2047_v40 }
 0x12d   : > { %4096 = vmatpush3.bf16.xpose.msra.mxu1 %v2094_v42  ;;  %4101 = vmatprep.subr.bf16.mxu0 %v4498_v1 }
 0x12e   : > { %4107 = vmatprep.subr.bf16.mxu1 %v4498_v1 }
 0x133   : > { %4092 = vmatmul.mubr.msk.bf16.vlgmr.msra.gmra.mxu0 %vm2042_vm2, %v2026_v48 }
 0x134   : > { %4098 = vmatmul.mubr.msk.bf16.vlgmr.msra.gmra.mxu1 %vm2042_vm2, %v2027_v50  ;;  %v1110_v43 = vpop.f32.mrf.mxu0  ;;  %4103 = vmatprep.mubr.msk.bf16.mxu0 %vm4499_vm0, %v4498_v1 }
 0x135   : > { %v1175_v44 = vpop.f32.mrf.mxu1  ;;  %4109 = vmatprep.mubr.msk.bf16.mxu1 %vm4499_vm0, %v4498_v1 }
 0x136   : > { %v3931_v45 = vpop.f32.mrf.mxu0 }
 0x137   : > { %v3943_v46 = vpop.f32.mrf.mxu1 }
 0x138   : > { %v1113_v47 = vpop.f32.mrf.mxu0 }
 0x139   : > { %v2036_v11 = vpack.c.bf16 %v1113_v47, %v1110_v43  ;;  %v1178_v49 = vpop.f32.mrf.mxu1 }
 0x13a   : > { %v2037_v51 = vpack.c.bf16 %v1178_v49, %v1175_v44  ;;  %v3932_v52 = vpop.f32.mrf.mxu0 }
 0x13b   : > { %v2141_v53 = vsel %vm2042_vm2, %v2036_v11, 0  ;;  %v3944_v48 = vpop.f32.mrf.mxu1 }
 0x13c   : > { %v2188_v50 = vsel %vm2042_vm2, %v2037_v51, 0  ;;  %4102 = vmatpush3.bf16.xpose.msra.mxu0 %v2141_v53 }
 0x13d   : > { %4108 = vmatpush3.bf16.xpose.msra.mxu1 %v2188_v50  ;;  %4113 = vmatprep.subr.bf16.mxu0 %v4498_v1 }
 0x13e   : > { %4119 = vmatprep.subr.bf16.mxu1 %v4498_v1 }
 0x143   : > { %4104 = vmatmul.mubr.msk.bf16.vlgmr.msra.gmra.mxu0 %vm2042_vm2, %v2028_v62 }
 0x144   : > { %4110 = vmatmul.mubr.msk.bf16.vlgmr.msra.gmra.mxu1 %vm2042_vm2, %v2029_v0  ;;  %v1240_v54 = vpop.f32.mrf.mxu0  ;;  %4115 = vmatprep.mubr.msk.bf16.mxu0 %vm4499_vm0, %v4498_v1 }
 0x145   : > { %v1305_v56 = vpop.f32.mrf.mxu1  ;;  %4121 = vmatprep.mubr.msk.bf16.mxu1 %vm4499_vm0, %v4498_v1 }
 0x146   : > { %v3955_v59 = vpop.f32.mrf.mxu0 }
 0x147   : > { %v3967_v61 = vpop.f32.mrf.mxu1 }
 0x148   : > { %v1243_v63 = vpop.f32.mrf.mxu0 }
 0x149   : > { %v2038_v2 = vpack.c.bf16 %v1243_v63, %v1240_v54  ;;  %v1308_v57 = vpop.f32.mrf.mxu1 }
 0x14a   : > { %v2039_v58 = vpack.c.bf16 %v1308_v57, %v1305_v56  ;;  %v3956_v62 = vpop.f32.mrf.mxu0 }
 0x14b   : > { %v2235_v3 = vsel %vm2042_vm2, %v2038_v2, 0  ;;  %v3968_v55 = vpop.f32.mrf.mxu1 }
 0x14c   : > { %v2282_v60 = vsel %vm2042_vm2, %v2039_v58, 0  ;;  %4114 = vmatpush3.bf16.xpose.msra.mxu0 %v2235_v3 }
 0x14d   : > { %4120 = vmatpush3.bf16.xpose.msra.mxu1 %v2282_v60  ;;  %4125 = vmatprep.subr.bf16.mxu0 %v4498_v1 }
 0x14e   : > { %4131 = vmatprep.subr.bf16.mxu1 %v4498_v1 }
 0x153   : > { %4116 = vmatmul.mubr.msk.bf16.vlgmr.msra.gmra.mxu0 %vm2042_vm2, %v2030_v14 }
 0x154   : > { %4122 = vmatmul.mubr.msk.bf16.vlgmr.msra.gmra.mxu1 %vm2042_vm2, %v2031_v16  ;;  %v1370_v0 = vpop.f32.mrf.mxu0  ;;  %4127 = vmatprep.mubr.msk.bf16.mxu0 %vm4499_vm0, %v4498_v1 }
 0x155   : > { %v1435_v4 = vpop.f32.mrf.mxu1  ;;  %4133 = vmatprep.mubr.msk.bf16.mxu1 %vm4499_vm0, %v4498_v1 }
 0x156   : > { %v3979_v5 = vpop.f32.mrf.mxu0 }
 0x157   : > { %v3991_v7 = vpop.f32.mrf.mxu1 }
 0x158   : > { %v1373_v10 = vpop.f32.mrf.mxu0 }
 0x159   : > { %v2040_v13 = vpack.c.bf16 %v1373_v10, %v1370_v0  ;;  %v1438_v8 = vpop.f32.mrf.mxu1 }
 0x15a   : > { %v2041_v9 = vpack.c.bf16 %v1438_v8, %v1435_v4  ;;  %v3980_v14 = vpop.f32.mrf.mxu0 }
 0x15b   : > { %v2329_v15 = vsel %vm2042_vm2, %v2040_v13, 0  ;;  %v3992_v6 = vpop.f32.mrf.mxu1 }
 0x15c   : > { %v2376_v12 = vsel %vm2042_vm2, %v2041_v9, 0  ;;  %4126 = vmatpush3.bf16.xpose.msra.mxu0 %v2329_v15 }
 0x15d   : > { %4132 = vmatpush3.bf16.xpose.msra.mxu1 %v2376_v12  ;;  %4137 = vmatprep.subr.bf16.mxu0 %v4498_v1 }
 0x15e   : > { %4143 = vmatprep.subr.bf16.mxu1 %v4498_v1 }
 0x163   : > { %4128 = vmatmul.mubr.msk.bf16.vlgmr.msra.gmra.mxu0 %vm2042_vm2, %v2032_v28 }
 0x164   : > { %4134 = vmatmul.mubr.msk.bf16.vlgmr.msra.gmra.mxu1 %vm2042_vm2, %v2033_v30  ;;  %v1564_v16 = vpop.f32.mrf.mxu0  ;;  %4139 = vmatprep.mubr.msk.bf16.mxu0 %vm4499_vm0, %v4498_v1 }
 0x165   : > { %v1629_v17 = vpop.f32.mrf.mxu1  ;;  %4145 = vmatprep.mubr.msk.bf16.mxu1 %vm4499_vm0, %v4498_v1 }
 0x166   : > { %v4003_v18 = vpop.f32.mrf.mxu0 }
 0x167   : > { %v4015_v19 = vpop.f32.mrf.mxu1 }
 0x168   : > { %v1567_v20 = vpop.f32.mrf.mxu0 }
 0x169   : > { %v2604_v22 = vpack.c.bf16 %v1567_v20, %v1564_v16  ;;  %v1632_v23 = vpop.f32.mrf.mxu1 }
 0x16a   : > { %v4004_v24 = vpop.f32.mrf.mxu0  ;;  %v2605_v25 = vpack.c.bf16 %v1632_v23, %v1629_v17 }
 0x16b   : > { %4138 = vmatpush3.bf16.msra.mxu0 %v2604_v22  ;;  %v4016_v27 = vpop.f32.mrf.mxu1 }
 0x16c   : > { %4144 = vmatpush3.bf16.msra.mxu1 %v2605_v25  ;;  %4149 = vmatprep.subr.bf16.mxu0 %v4498_v1 }
 0x16d   : > { %4155 = vmatprep.subr.bf16.mxu1 %v4498_v1 }
 0x174   : > { %v5187_v21 = vpop.f32.mrf.mxu0 }
 0x175   : > { %v5189_v26 = vpop.f32.mrf.mxu1 }
 0x176   : > { %v4027_v28 = vpop.f32.mrf.mxu0 }
 0x177   : > { %v4039_v29 = vpop.f32.mrf.mxu1 }
 0x178   : > { %v5191_v30 = vpop.f32.mrf.mxu0 }
 0x179   : > { %v2606_v31 = vpack.c.bf16 %v5191_v30, %v5187_v21  ;;  %v5195_v32 = vpop.f32.mrf.mxu1 }
 0x17a   : > { %v2607_v33 = vpack.c.bf16 %v5195_v32, %v5189_v26  ;;  %v4028_v34 = vpop.f32.mrf.mxu0 }
 0x17b   : > { %v4040_v35 = vpop.f32.mrf.mxu1 }
 0x184   : > { %v5199_v36 = vpop.f32.mrf.mxu0 }
 0x185   : > { %v5201_v37 = vpop.f32.mrf.mxu1 }
 0x186   : > { %v4051_v38 = vpop.f32.mrf.mxu0 }
 0x187   : > { %v4063_v39 = vpop.f32.mrf.mxu1 }
 0x188   : > { %v5203_v40 = vpop.f32.mrf.mxu0 }
 0x189   : > { %v2608_v41 = vpack.c.bf16 %v5203_v40, %v5199_v36  ;;  %v5207_v42 = vpop.f32.mrf.mxu1 }
 0x18a   : > { %v2609_v43 = vpack.c.bf16 %v5207_v42, %v5201_v37  ;;  %v4052_v44 = vpop.f32.mrf.mxu0 }
 0x18b   : > { %v4064_v45 = vpop.f32.mrf.mxu1 }
 0x194   : > { %v5211_v46 = vpop.f32.mrf.mxu0 }
 0x195   : > { %v5213_v47 = vpop.f32.mrf.mxu1 }
 0x196   : > { %v4075_v11 = vpop.f32.mrf.mxu0 }
 0x197   : > { %v4087_v49 = vpop.f32.mrf.mxu1 }
 0x198   : > { %v5215_v51 = vpop.f32.mrf.mxu0 }
 0x199   : > { %v2610_v52 = vpack.c.bf16 %v5215_v51, %v5211_v46  ;;  %v5219_v53 = vpop.f32.mrf.mxu1 }
 0x19a   : > { %v2611_v48 = vpack.c.bf16 %v5219_v53, %v5213_v47  ;;  %v4076_v50 = vpop.f32.mrf.mxu0  ;;  %v2972_v53 = vld [vmem:[%s5567_s4] sm:$0xf] }
 0x19b   : > { %v4088_v54 = vpop.f32.mrf.mxu1 }
 0x1f3   : > { %v5223_v56 = vpop.f32.mrf.mxu0 }
 0x1f4   : > { %v5225_v59 = vpop.f32.mrf.mxu1  ;;  %v2420_v61 = vsel %vm2419_vm3, %v5223_v56, -inf }
 0x1f5   : > { %v2426_v63 = vsel %vm2419_vm3, %v5225_v59, -inf  ;;  %2421 = vmax.xlane.f32.xlu0 %v2420_v61  ;;  %v4093_v2 = vpop.f32.mrf.mxu0 }
 0x1f6   : > { %2427 = vmax.xlane.f32.xlu1 %v2426_v63  ;;  %v4099_v57 = vpop.f32.mrf.mxu1 }
 0x1f7   : > { %v5231_v58 = vpop.f32.mrf.mxu0 }
 0x1f8   : > { %v5233_v62 = vpop.f32.mrf.mxu1  ;;  %v2423_v3 = vsel %vm2419_vm3, %v5231_v58, -inf }
 0x1f9   : > { %v2429_v55 = vsel %vm2419_vm3, %v5233_v62, -inf  ;;  %2424 = vmax.xlane.f32.xlu0 %v2423_v3  ;;  %v4094_v60 = vpop.f32.mrf.mxu0 }
 0x1fa   : > { %2430 = vmax.xlane.f32.xlu1 %v2429_v55  ;;  %v4100_v0 = vpop.f32.mrf.mxu1 }
 0x203   : > { %v5239_v4 = vpop.f32.mrf.mxu0 }
 0x204   : > { %v5241_v5 = vpop.f32.mrf.mxu1  ;;  %v2432_v7 = vsel %vm2419_vm3, %v5239_v4, -inf }
 0x205   : > { %2433 = vmax.xlane.f32.xlu0 %v2432_v7  ;;  %v4105_v10 = vpop.f32.mrf.mxu0  ;;  %v2438_v14 = vsel %vm2419_vm3, %v5241_v5, -inf }
 0x206   : > { %v4111_v13 = vpop.f32.mrf.mxu1 }
 0x207   : > { %v5245_v8 = vpop.f32.mrf.mxu0 }
 0x208   : > { %v5247_v9 = vpop.f32.mrf.mxu1  ;;  %v2435_v15 = vsel %vm2419_vm3, %v5245_v8, -inf }
 0x209   : > { %2439 = vmax.xlane.f32.xlu0 %v2438_v14  ;;  %2436 = vmax.xlane.f32.xlu1 %v2435_v15  ;;  %v4106_v6 = vpop.f32.mrf.mxu0  ;;  %v2441_v16 = vsel %vm2419_vm3, %v5247_v9, -inf }
 0x20a   : > { %v4112_v12 = vpop.f32.mrf.mxu1 }
 0x20d   : > { %2442 = vmax.xlane.f32.xlu1 %v2441_v16 }
 0x213   : > { %v5255_v17 = vpop.f32.mrf.mxu0 }
 0x214   : > { %v5257_v18 = vpop.f32.mrf.mxu1  ;;  %v2444_v19 = vsel %vm2419_vm3, %v5255_v17, -inf }
 0x215   : > { %2445 = vmax.xlane.f32.xlu0 %v2444_v19  ;;  %v4117_v20 = vpop.f32.mrf.mxu0  ;;  %v2450_v25 = vsel %vm2419_vm3, %v5257_v18, -inf }
 0x216   : > { %v4123_v22 = vpop.f32.mrf.mxu1 }
 0x217   : > { %v5261_v23 = vpop.f32.mrf.mxu0 }
 0x218   : > { %v5263_v24 = vpop.f32.mrf.mxu1  ;;  %v2447_v27 = vsel %vm2419_vm3, %v5261_v23, -inf }
 0x219   : > { %2451 = vmax.xlane.f32.xlu0 %v2450_v25  ;;  %2448 = vmax.xlane.f32.xlu1 %v2447_v27  ;;  %v4118_v28 = vpop.f32.mrf.mxu0  ;;  %v2453_v34 = vsel %vm2419_vm3, %v5263_v24, -inf }
 0x21a   : > { %v4124_v29 = vpop.f32.mrf.mxu1 }
 0x21d   : > { %2454 = vmax.xlane.f32.xlu1 %v2453_v34 }
 0x223   : > { %v5271_v35 = vpop.f32.mrf.mxu0 }
 0x224   : > { %v5273_v38 = vpop.f32.mrf.mxu1  ;;  %v2456_v39 = vsel %vm2419_vm3, %v5271_v35, -inf }
 0x225   : > { %2457 = vmax.xlane.f32.xlu0 %v2456_v39  ;;  %v4129_v44 = vpop.f32.mrf.mxu0  ;;  %v2462_v50 = vsel %vm2419_vm3, %v5273_v38, -inf }
 0x226   : > { %v4135_v45 = vpop.f32.mrf.mxu1 }
 0x227   : > { %v5277_v11 = vpop.f32.mrf.mxu0 }
 0x228   : > { %v5279_v49 = vpop.f32.mrf.mxu1  ;;  %v2459_v54 = vsel %vm2419_vm3, %v5277_v11, -inf }
 0x229   : > { %2463 = vmax.xlane.f32.xlu0 %v2462_v50  ;;  %2460 = vmax.xlane.f32.xlu1 %v2459_v54  ;;  %v4130_v61 = vpop.f32.mrf.mxu0  ;;  %v2465_v2 = vsel %vm2419_vm3, %v5279_v49, -inf }
 0x22a   : > { %v4136_v63 = vpop.f32.mrf.mxu1 }
 0x22d   : > { %2466 = vmax.xlane.f32.xlu1 %v2465_v2 }
 0x27e   : > { %v2422_v57 = vpop.xlane.xlu0 %2421 }
 0x27f   : > { %v2428_v3 = vpop.xlane.xlu1 %2427  ;;  %v2468_v55 = vsub.f32 %v5223_v56, %v2422_v57 }
 0x280   : > { %v2470_v60 = vsub.f32 %v5225_v59, %v2428_v3 }
 0x281   : > { %v2484_v0 = vmul.f32 1.442695, %v2468_v55 }
 0x282   : > { %v2488_v7 = vmul.f32 1.442695, %v2470_v60  ;;  %v2425_v10 = vpop.xlane.xlu0 %2424 }
 0x283   : > { %4372 = vpow2.f32 %v2484_v0  ;;  %v2431_v13 = vpop.xlane.xlu1 %2430  ;;  %v2469_v14 = vsub.f32 %v5231_v58, %v2425_v10 }
 0x284   : > { %v2471_v15 = vsub.f32 %v5233_v62, %v2431_v13  ;;  %4374 = vpow2.f32 %v2488_v7 }
 0x285   : > { %v2486_v6 = vmul.f32 1.442695, %v2469_v14 }
 0x286   : > { %v2490_v12 = vmul.f32 1.442695, %v2471_v15 }
 0x287   : > { %4376 = vpow2.f32 %v2486_v6 }
 0x288   : > { %4378 = vpow2.f32 %v2490_v12 }
 0x28e   : > { %v2434_v16 = vpop.xlane.xlu0 %2433 }
 0x28f   : > { %v2472_v19 = vsub.f32 %v5239_v4, %v2434_v16 }
 0x290   : > { %v5292_v56 = vpop.eup %4372 }
 0x291   : > { %v2492_v59 = vmul.f32 1.442695, %v2472_v19  ;;  %v2516_v20 = vsel %vm2419_vm3, %v5292_v56, 0.0  ;;  %v5296_v22 = vpop.eup %4374 }
 0x292   : > { %v2440_v25 = vpop.xlane.xlu0 %2439  ;;  %v2437_v58 = vpop.xlane.xlu1 %2436  ;;  %2517 = vadd.xlane.f32.xlu0 %v2516_v20  ;;  %v2522_v34 = vsel %vm2419_vm3, %v5296_v22, 0.0 }
 0x293   : > { %4380 = vpow2.f32 %v2492_v59  ;;  %v2474_v62 = vsub.f32 %v5241_v5, %v2440_v25  ;;  %v2473_v27 = vsub.f32 %v5245_v8, %v2437_v58 }
 0x294   : > { %v5300_v28 = vpop.eup %4376 }
 0x295   : > { %v2496_v29 = vmul.f32 1.442695, %v2474_v62  ;;  %v2494_v4 = vmul.f32 1.442695, %v2473_v27  ;;  %v2519_v39 = vsel %vm2419_vm3, %v5300_v28, 0.0  ;;  %v5306_v44 = vpop.eup %4378 }
 0x296   : > { %v2443_v45 = vpop.xlane.xlu1 %2442  ;;  %2523 = vadd.xlane.f32.xlu0 %v2522_v34  ;;  %2520 = vadd.xlane.f32.xlu1 %v2519_v39  ;;  %v2525_v50 = vsel %vm2419_vm3, %v5306_v44, 0.0 }
 0x297   : > { %4382 = vpow2.f32 %v2496_v29  ;;  %v2475_v5 = vsub.f32 %v5247_v9, %v2443_v45 }
 0x298   : > { %4384 = vpow2.f32 %v2494_v4 }
 0x299   : > { %v2498_v8 = vmul.f32 1.442695, %v2475_v5 }
 0x29a   : > { %2526 = vadd.xlane.f32.xlu1 %v2525_v50 }
 0x29b   : > { %4386 = vpow2.f32 %v2498_v8 }
 0x29e   : > { %v2446_v54 = vpop.xlane.xlu0 %2445 }
 0x29f   : > { %v2476_v61 = vsub.f32 %v5255_v17, %v2446_v54 }
 0x2a0   : > { %v5312_v63 = vpop.eup %4380 }
 0x2a1   : > { %v2500_v2 = vmul.f32 1.442695, %v2476_v61  ;;  %v2528_v57 = vsel %vm2419_vm3, %v5312_v63, 0.0 }
 0x2a2   : > { %v2452_v3 = vpop.xlane.xlu0 %2451  ;;  %v2449_v55 = vpop.xlane.xlu1 %2448  ;;  %2529 = vadd.xlane.f32.xlu0 %v2528_v57 }
 0x2a3   : > { %4388 = vpow2.f32 %v2500_v2  ;;  %v2478_v9 = vsub.f32 %v5257_v18, %v2452_v3  ;;  %v2477_v60 = vsub.f32 %v5261_v23, %v2449_v55 }
 0x2a4   : > { %v5318_v0 = vpop.eup %4382 }
 0x2a5   : > { %v5320_v7 = vpop.eup %4384  ;;  %v2504_v10 = vmul.f32 1.442695, %v2478_v9  ;;  %v2502_v17 = vmul.f32 1.442695, %v2477_v60  ;;  %v2534_v13 = vsel %vm2419_vm3, %v5318_v0, 0.0 }
 0x2a6   : > { %v2455_v14 = vpop.xlane.xlu1 %2454  ;;  %2535 = vadd.xlane.f32.xlu0 %v2534_v13  ;;  %v2531_v15 = vsel %vm2419_vm3, %v5320_v7, 0.0 }
 0x2a7   : > { %4390 = vpow2.f32 %v2504_v10  ;;  %v2479_v6 = vsub.f32 %v5263_v24, %v2455_v14  ;;  %2532 = vadd.xlane.f32.xlu1 %v2531_v15 }
 0x2a8   : > { %v5327_v18 = vpop.eup %4386  ;;  %4392 = vpow2.f32 %v2502_v17 }
 0x2a9   : > { %v2506_v23 = vmul.f32 1.442695, %v2479_v6  ;;  %v2537_v12 = vsel %vm2419_vm3, %v5327_v18, 0.0 }
 0x2ab   : > { %4394 = vpow2.f32 %v2506_v23  ;;  %2538 = vadd.xlane.f32.xlu1 %v2537_v12 }
 0x2ae   : > { %v2458_v16 = vpop.xlane.xlu0 %2457 }
 0x2af   : > { %v2480_v19 = vsub.f32 %v5271_v35, %v2458_v16 }
 0x2b0   : > { %v5332_v59 = vpop.eup %4388 }
 0x2b1   : > { %v2508_v20 = vmul.f32 1.442695, %v2480_v19  ;;  %v2540_v25 = vsel %vm2419_vm3, %v5332_v59, 0.0 }
 0x2b2   : > { %2541 = vadd.xlane.f32.xlu0 %v2540_v25  ;;  %v2464_v24 = vpop.xlane.xlu0 %2463  ;;  %v2461_v58 = vpop.xlane.xlu1 %2460 }
 0x2b3   : > { %4396 = vpow2.f32 %v2508_v20  ;;  %v2482_v62 = vsub.f32 %v5273_v38, %v2464_v24  ;;  %v2481_v27 = vsub.f32 %v5277_v11, %v2461_v58 }
 0x2b4   : > { %v5338_v29 = vpop.eup %4390 }
 0x2b5   : > { %v5340_v4 = vpop.eup %4392  ;;  %v2512_v34 = vmul.f32 1.442695, %v2482_v62  ;;  %v2510_v35 = vmul.f32 1.442695, %v2481_v27  ;;  %v2546_v39 = vsel %vm2419_vm3, %v5338_v29, 0.0 }
 0x2b6   : > { %2547 = vadd.xlane.f32.xlu0 %v2546_v39  ;;  %v2543_v45 = vsel %vm2419_vm3, %v5340_v4, 0.0  ;;  %v2467_v5 = vpop.xlane.xlu1 %2466 }
 0x2b7   : > { %4398 = vpow2.f32 %v2512_v34  ;;  %2544 = vadd.xlane.f32.xlu1 %v2543_v45  ;;  %v2483_v38 = vsub.f32 %v5279_v49, %v2467_v5 }
 0x2b8   : > { %v5347_v8 = vpop.eup %4394  ;;  %4400 = vpow2.f32 %v2510_v35 }
 0x2b9   : > { %v2514_v11 = vmul.f32 1.442695, %v2483_v38  ;;  %v2549_v50 = vsel %vm2419_vm3, %v5347_v8, 0.0 }
 0x2bb   : > { %4402 = vpow2.f32 %v2514_v11  ;;  %2550 = vadd.xlane.f32.xlu1 %v2549_v50 }
 0x2c0   : > { %v5351_v54 = vpop.eup %4396 }
 0x2c1   : > { %v2552_v61 = vsel %vm2419_vm3, %v5351_v54, 0.0 }
 0x2c2   : > { %2553 = vadd.xlane.f32.xlu0 %v2552_v61 }
 0x2c4   : > { %v5355_v2 = vpop.eup %4398 }
 0x2c5   : > { %v5357_v57 = vpop.eup %4400  ;;  %v2558_v49 = vsel %vm2419_vm3, %v5355_v2, 0.0 }
 0x2c6   : > { %2559 = vadd.xlane.f32.xlu0 %v2558_v49  ;;  %v2555_v3 = vsel %vm2419_vm3, %v5357_v57, 0.0 }
 0x2c7   : > { %2556 = vadd.xlane.f32.xlu1 %v2555_v3 }
 0x2c8   : > { %v5363_v55 = vpop.eup %4402 }
 0x2c9   : > { %v2561_v9 = vsel %vm2419_vm3, %v5363_v55, 0.0 }
 0x2cb   : > { %2562 = vadd.xlane.f32.xlu1 %v2561_v9  ;;  %v2974_v9 = vld [vmem:[%s5567_s4 + $0x8] sm:$0xf] }
 0x31b   : > { %v2518_v60 = vpop.xlane.xlu0 %2517 }
 0x31c   : > { %4404 = vrcp.f32 %v2518_v60 }
 0x31f   : > { %v2524_v10 = vpop.xlane.xlu0 %2523  ;;  %v2521_v17 = vpop.xlane.xlu1 %2520 }
 0x320   : > { %4406 = vrcp.f32 %v2521_v17 }
 0x321   : > { %4408 = vrcp.f32 %v2524_v10 }
 0x323   : > { %v2527_v13 = vpop.xlane.xlu1 %2526 }
 0x324   : > { %4410 = vrcp.f32 %v2527_v13 }
 0x329   : > { %v4405_v15 = vpop.eup %4404 }
 0x32a   : > { %v2580_v12 = vmul.f32 %v4405_v15, %v5292_v56  ;;  %v2975_v15 = vld [vmem:[%s5567_s4 + $0xc] sm:$0xf] }
 0x32b   : > { %v2530_v14 = vpop.xlane.xlu0 %2529 }
 0x32c   : > { %4412 = vrcp.f32 %v2530_v14  ;;  %v3079_v14 = vsel %vm2983_vm4, %v2974_v9, 0 }
 0x32d   : > { %v4407_v6 = vpop.eup %4406 }
 0x32e   : > { %v4409_v23 = vpop.eup %4408  ;;  %v2581_v16 = vmul.f32 %v4407_v6, %v5300_v28 }
 0x32f   : > { %v2536_v19 = vpop.xlane.xlu0 %2535  ;;  %v2582_v58 = vmul.f32 %v4409_v23, %v5296_v22 }
 0x330   : > { %v2533_v20 = vpop.xlane.xlu1 %2532  ;;  %v2596_v24 = vpack.c.bf16 %v2581_v16, %v2580_v12  ;;  %v3126_v16 = vsel %vm2983_vm4, %v2975_v15, 0 }
 0x331   : > { %v4411_v25 = vpop.eup %4410  ;;  %4414 = vrcp.f32 %v2533_v20 }
 0x332   : > { %v2583_v62 = vmul.f32 %v4411_v25, %v5306_v44  ;;  %4416 = vrcp.f32 %v2536_v19  ;;  %4140 = vmatmul.mubr.msk.bf16.vlgmr.msra.gmra.mxu0 %vm2419_vm3, %v2596_v24  ;;  %v2976_v24 = vld [vmem:[%s5567_s4 + $0x10] sm:$0xf] }
 0x333   : > { %4150 = vmatpush3.bf16.msra.mxu0 %v2606_v31  ;;  %4151 = vmatprep.mubr.msk.bf16.mxu0 %vm4499_vm0, %v4498_v1 }
 0x334   : > { %v2539_v27 = vpop.xlane.xlu1 %2538  ;;  %v2597_v56 = vpack.c.bf16 %v2583_v62, %v2582_v58  ;;  %4161 = vmatprep.subr.bf16.mxu0 %v4498_v1 }
 0x335   : > { %4418 = vrcp.f32 %v2539_v27 }
 0x336   : > { %4146 = vmatmul.mubr.msk.bf16.vlgmr.msra.gmra.mxu1 %vm2419_vm3, %v2597_v56  ;;  %v3173_v56 = vsel %vm2983_vm4, %v2976_v24, 0 }
 0x337   : > { %4156 = vmatpush3.bf16.msra.mxu1 %v2607_v33  ;;  %4157 = vmatprep.mubr.msk.bf16.mxu1 %vm4499_vm0, %v4498_v1 }
 0x338   : > { %4167 = vmatprep.subr.bf16.mxu1 %v4498_v1 }
 0x339   : > { %v4413_v30 = vpop.eup %4412 }
 0x33a   : > { %v2584_v22 = vmul.f32 %v4413_v30, %v5312_v63 }
 0x33b   : > { %v2542_v21 = vpop.xlane.xlu0 %2541 }
 0x33c   : > { %4420 = vrcp.f32 %v2542_v21 }
 0x33e   : > { %v4415_v31 = vpop.eup %4414 }
 0x33f   : > { %v2585_v28 = vmul.f32 %v4415_v31, %v5320_v7  ;;  %v4417_v44 = vpop.eup %4416  ;;  %v2548_v34 = vpop.xlane.xlu0 %2547  ;;  %v2977_v31 = vld [vmem:[%s5567_s4 + $0x14] sm:$0xf] }
 0x340   : > { %v2545_v35 = vpop.xlane.xlu1 %2544  ;;  %v2586_v32 = vmul.f32 %v4417_v44, %v5318_v0  ;;  %v3220_v44 = vsel %vm2983_vm4, %v2977_v31, 0 }
 0x341   : > { %4422 = vrcp.f32 %v2545_v35  ;;  %v2598_v39 = vpack.c.bf16 %v2585_v28, %v2584_v22 }
 0x342   : > { %v4419_v26 = vpop.eup %4418  ;;  %4424 = vrcp.f32 %v2548_v34 }
 0x343   : > { %4152 = vmatmul.mubr.msk.bf16.vlgmr.msra.gmra.mxu0 %vm2419_vm3, %v2598_v39  ;;  %v2587_v33 = vmul.f32 %v4419_v26, %v5327_v18  ;;  %v2978_v26 = vld [vmem:[%s5567_s4 + $0x18] sm:$0xf] }
 0x344   : > { %4162 = vmatpush3.bf16.msra.mxu0 %v2608_v41  ;;  %v2551_v63 = vpop.xlane.xlu1 %2550  ;;  %4163 = vmatprep.mubr.msk.bf16.mxu0 %vm4499_vm0, %v4498_v1 }
 0x345   : > { %4426 = vrcp.f32 %v2551_v63  ;;  %v2599_v7 = vpack.c.bf16 %v2587_v33, %v2586_v32  ;;  %4173 = vmatprep.subr.bf16.mxu0 %v4498_v1 }
 0x347   : > { %4158 = vmatmul.mubr.msk.bf16.vlgmr.msra.gmra.mxu1 %vm2419_vm3, %v2599_v7  ;;  %v3267_v7 = vsel %vm2983_vm4, %v2978_v26, 0 }
 0x348   : > { %4168 = vmatpush3.bf16.msra.mxu1 %v2609_v43  ;;  %4169 = vmatprep.mubr.msk.bf16.mxu1 %vm4499_vm0, %v4498_v1 }
 0x349   : > { %4179 = vmatprep.subr.bf16.mxu1 %v4498_v1  ;;  %v4421_v40 = vpop.eup %4420 }
 0x34a   : > { %v2588_v0 = vmul.f32 %v4421_v40, %v5332_v59 }
 0x34b   : > { %v2554_v36 = vpop.xlane.xlu0 %2553 }
 0x34c   : > { %4428 = vrcp.f32 %v2554_v36 }
 0x34e   : > { %v4423_v41 = vpop.eup %4422 }
 0x34f   : > { %v2589_v18 = vmul.f32 %v4423_v41, %v5340_v4  ;;  %v4425_v45 = vpop.eup %4424  ;;  %v2560_v5 = vpop.xlane.xlu0 %2559  ;;  %v2979_v41 = vld [vmem:[%s5567_s4 + $0x1c] sm:$0xf] }
 0x350   : > { %v2557_v38 = vpop.xlane.xlu1 %2556  ;;  %v2590_v42 = vmul.f32 %v4425_v45, %v5338_v29  ;;  %v3314_v45 = vsel %vm2983_vm4, %v2979_v41, 0 }
 0x351   : > { %4430 = vrcp.f32 %v2557_v38  ;;  %v2600_v11 = vpack.c.bf16 %v2589_v18, %v2588_v0 }
 0x352   : > { %v4427_v37 = vpop.eup %4426  ;;  %4432 = vrcp.f32 %v2560_v5 }
 0x353   : > { %4164 = vmatmul.mubr.msk.bf16.vlgmr.msra.gmra.mxu0 %vm2419_vm3, %v2600_v11  ;;  %v2591_v43 = vmul.f32 %v4427_v37, %v5347_v8 }
 0x354   : > { %4174 = vmatpush3.bf16.msra.mxu0 %v2610_v52  ;;  %v2563_v59 = vpop.xlane.xlu1 %2562  ;;  %4175 = vmatprep.mubr.msk.bf16.mxu0 %vm4499_vm0, %v4498_v1 }
 0x355   : > { %4434 = vrcp.f32 %v2563_v59  ;;  %v2601_v4 = vpack.c.bf16 %v2591_v43, %v2590_v42  ;;  %4185 = vmatprep.subr.bf16.mxu0 %v4498_v1 }
 0x357   : > { %4170 = vmatmul.mubr.msk.bf16.vlgmr.msra.gmra.mxu1 %vm2419_vm3, %v2601_v4 }
 0x358   : > { %4180 = vmatpush3.bf16.msra.mxu1 %v2611_v48  ;;  %4181 = vmatprep.mubr.msk.bf16.mxu1 %vm4499_vm0, %v4498_v1  ;;  %v2985_v48 = vsel %vm2983_vm4, %v2972_v53, 0 }
 0x359   : > { %4191 = vmatprep.subr.bf16.mxu1 %v4498_v1  ;;  %v4429_v46 = vpop.eup %4428 }
 0x35a   : > { %v2592_v52 = vmul.f32 %v4429_v46, %v5351_v54  ;;  %v2973_v54 = vld [vmem:[%s5567_s4 + $0x4] sm:$0xf] }
 0x35e   : > { %v4431_v51 = vpop.eup %4430 }
 0x35f   : > { %v2593_v29 = vmul.f32 %v4431_v51, %v5357_v57  ;;  %v4433_v8 = vpop.eup %4432 }
 0x360   : > { %v2594_v49 = vmul.f32 %v4433_v8, %v5355_v2  ;;  %v3032_v2 = vsel %vm2983_vm4, %v2973_v54, 0 }
 0x361   : > { %v2602_v50 = vpack.c.bf16 %v2593_v29, %v2592_v52 }
 0x362   : > { %v4435_v61 = vpop.eup %4434 }
 0x363   : > { %v2595_v3 = vmul.f32 %v4435_v61, %v5363_v55  ;;  %4176 = vmatmul.mubr.msk.bf16.vlgmr.msra.gmra.mxu0 %vm2419_vm3, %v2602_v50 }
 0x364   : > { %4187 = vmatprep.mubr.msk.bf16.mxu0 %vm4499_vm0, %v4498_v1  ;;  %4186 = vmatpush3.bf16.msra.mxu0 %v2985_v48 }
 0x365   : > { %v2603_v47 = vpack.c.bf16 %v2595_v3, %v2594_v49  ;;  %4197 = vmatprep.subr.bf16.mxu0 %v4498_v1 }
 0x367   : > { %4182 = vmatmul.mubr.msk.bf16.vlgmr.msra.gmra.mxu1 %vm2419_vm3, %v2603_v47 }
 0x368   : > { %4193 = vmatprep.mubr.msk.bf16.mxu1 %vm4499_vm0, %v4498_v1  ;;  %4192 = vmatpush3.bf16.msra.mxu1 %v3032_v2 }
 0x369   : > { %4203 = vmatprep.subr.bf16.mxu1 %v4498_v1 }
 0x3f2   : > { %v2649_v57 = vpop.f32.mrf.mxu0 }
 0x3f4   : > { %v4141_v55 = vpop.f32.mrf.mxu0 }
 0x3f6   : > { %v2693_v60 = vpop.f32.mrf.mxu1  ;;  %v2652_v10 = vpop.f32.mrf.mxu0 }
 0x3f7   : > { %v2964_v17 = vpack.c.bf16 %v2652_v10, %v2649_v57 }
 0x3f8   : > { %v4147_v13 = vpop.f32.mrf.mxu1  ;;  %v4142_v6 = vpop.f32.mrf.mxu0 }
 0x3f9   : > { %4188 = vmatmul.mubr.msk.bf16.vlgmr.msra.gmra.mxu0 %vm2042_vm2, %v2964_v17 }
 0x3fa   : > { %v2696_v23 = vpop.f32.mrf.mxu1  ;;  %4198 = vmatpush3.bf16.msra.mxu0 %v3079_v14  ;;  %4199 = vmatprep.mubr.msk.bf16.mxu0 %vm4499_vm0, %v4498_v1 }
 0x3fb   : > { %v2965_v12 = vpack.c.bf16 %v2696_v23, %v2693_v60  ;;  %4209 = vmatprep.subr.bf16.mxu0 %v4498_v1 }
 0x3fc   : > { %v4148_v19 = vpop.f32.mrf.mxu1 }
 0x3fd   : > { %4194 = vmatmul.mubr.msk.bf16.vlgmr.msra.gmra.mxu1 %vm2042_vm2, %v2965_v12 }
 0x3fe   : > { %4204 = vmatpush3.bf16.msra.mxu1 %v3126_v16  ;;  %4205 = vmatprep.mubr.msk.bf16.mxu1 %vm4499_vm0, %v4498_v1 }
 0x3ff   : > { %4215 = vmatprep.subr.bf16.mxu1 %v4498_v1 }
 0x403   : > { %v2737_v20 = vpop.f32.mrf.mxu0 }
 0x405   : > { %v4153_v25 = vpop.f32.mrf.mxu0 }
 0x407   : > { %v2740_v58 = vpop.f32.mrf.mxu0  ;;  %v2781_v62 = vpop.f32.mrf.mxu1 }
 0x408   : > { %v2966_v27 = vpack.c.bf16 %v2740_v58, %v2737_v20 }
 0x409   : > { %v4154_v21 = vpop.f32.mrf.mxu0  ;;  %v4159_v30 = vpop.f32.mrf.mxu1 }
 0x40a   : > { %4200 = vmatmul.mubr.msk.bf16.vlgmr.msra.gmra.mxu0 %vm2042_vm2, %v2966_v27 }
 0x40b   : > { %v2784_v22 = vpop.f32.mrf.mxu1  ;;  %4210 = vmatpush3.bf16.msra.mxu0 %v3173_v56  ;;  %4211 = vmatprep.mubr.msk.bf16.mxu0 %vm4499_vm0, %v4498_v1 }
 0x40c   : > { %v2967_v28 = vpack.c.bf16 %v2784_v22, %v2781_v62  ;;  %4221 = vmatprep.subr.bf16.mxu0 %v4498_v1 }
 0x40d   : > { %v4160_v34 = vpop.f32.mrf.mxu1 }
 0x40e   : > { %4206 = vmatmul.mubr.msk.bf16.vlgmr.msra.gmra.mxu1 %vm2042_vm2, %v2967_v28 }
 0x40f   : > { %4216 = vmatpush3.bf16.msra.mxu1 %v3220_v44  ;;  %4217 = vmatprep.mubr.msk.bf16.mxu1 %vm4499_vm0, %v4498_v1 }
 0x410   : > { %4227 = vmatprep.subr.bf16.mxu1 %v4498_v1 }
 0x413   : > { %v2825_v35 = vpop.f32.mrf.mxu0 }
 0x415   : > { %v4165_v39 = vpop.f32.mrf.mxu0 }
 0x417   : > { %v2828_v32 = vpop.f32.mrf.mxu0  ;;  %v2869_v33 = vpop.f32.mrf.mxu1 }
 0x418   : > { %v2968_v63 = vpack.c.bf16 %v2828_v32, %v2825_v35 }
 0x419   : > { %v4166_v36 = vpop.f32.mrf.mxu0  ;;  %v4171_v40 = vpop.f32.mrf.mxu1 }
 0x41a   : > { %4212 = vmatmul.mubr.msk.bf16.vlgmr.msra.gmra.mxu0 %vm2042_vm2, %v2968_v63 }
 0x41b   : > { %v2872_v0 = vpop.f32.mrf.mxu1  ;;  %4222 = vmatpush3.bf16.msra.mxu0 %v3267_v7  ;;  %4223 = vmatprep.mubr.msk.bf16.mxu0 %vm4499_vm0, %v4498_v1 }
 0x41c   : > { %v2969_v18 = vpack.c.bf16 %v2872_v0, %v2869_v33 }
 0x41d   : > { %v4172_v5 = vpop.f32.mrf.mxu1 }
 0x41e   : > { %4218 = vmatmul.mubr.msk.bf16.vlgmr.msra.gmra.mxu1 %vm2042_vm2, %v2969_v18  ;;  %v3625_v5 = vld [vmem:[%s5568_s5] ss:$0 sm:$0xff] }
 0x41f   : > { %4228 = vmatpush3.bf16.msra.mxu1 %v3314_v45  ;;  %4229 = vmatprep.mubr.msk.bf16.mxu1 %vm4499_vm0, %v4498_v1 }
 0x423   : > { %v2913_v38 = vpop.f32.mrf.mxu0 }
 0x425   : > { %v4177_v11 = vpop.f32.mrf.mxu0 }
 0x427   : > { %v2916_v37 = vpop.f32.mrf.mxu0  ;;  %v2957_v42 = vpop.f32.mrf.mxu1 }
 0x428   : > { %v2970_v43 = vpack.c.bf16 %v2916_v37, %v2913_v38 }
 0x429   : > { %v4178_v59 = vpop.f32.mrf.mxu0  ;;  %v4183_v4 = vpop.f32.mrf.mxu1 }
 0x42a   : > { %4224 = vmatmul.mubr.msk.bf16.vlgmr.msra.gmra.mxu0 %vm2042_vm2, %v2970_v43 }
 0x42b   : > { %v2960_v46 = vpop.f32.mrf.mxu1 }
 0x42c   : > { %v2971_v51 = vpack.c.bf16 %v2960_v46, %v2957_v42 }
 0x42d   : > { %v4184_v52 = vpop.f32.mrf.mxu1 }
 0x42e   : > { %4230 = vmatmul.mubr.msk.bf16.vlgmr.msra.gmra.mxu1 %vm2042_vm2, %v2971_v51 }
 0x4b9   : > { %v3021_v29 = vpop.f32.mrf.mxu0 }
 0x4ba   : > { %v3357_v16 = vsel %vm342_vm1, %v3021_v29, 0.0 }
 0x4bb   : > { %v4189_v8 = vpop.f32.mrf.mxu0 }
 0x4bd   : > { %v3068_v50 = vpop.f32.mrf.mxu1  ;;  %v3024_v61 = vpop.f32.mrf.mxu0 }
 0x4be   : > { %v3358_v23 = vsel %vm342_vm1, %v3068_v50, 0.0  ;;  %v3372_v27 = vsel %vm342_vm1, %v3024_v61, 0.0 }
 0x4bf   : > { %v4195_v49 = vpop.f32.mrf.mxu1  ;;  %v4190_v1 = vpop.f32.mrf.mxu0  ;;  %v3359_v20 = vadd.f32 %v3358_v23, %v3357_v16 }
 0x4c1   : > { %v3071_v3 = vpop.f32.mrf.mxu1 }
 0x4c2   : > { %v3373_v24 = vsel %vm342_vm1, %v3071_v3, 0.0 }
 0x4c3   : > { %v4196_v47 = vpop.f32.mrf.mxu1  ;;  %v3374_v30 = vadd.f32 %v3373_v24, %v3372_v27 }
 0x4ca   : > { %v3115_v53 = vpop.f32.mrf.mxu0 }
 0x4cb   : > { %v3360_v19 = vsel %vm342_vm1, %v3115_v53, 0.0 }
 0x4cc   : > { %v4201_v48 = vpop.f32.mrf.mxu0  ;;  %v3361_v62 = vadd.f32 %v3360_v19, %v3359_v20 }
 0x4ce   : > { %v3118_v54 = vpop.f32.mrf.mxu0  ;;  %v3162_v2 = vpop.f32.mrf.mxu1 }
 0x4cf   : > { %v3362_v58 = vsel %vm342_vm1, %v3162_v2, 0.0  ;;  %v3375_v56 = vsel %vm342_vm1, %v3118_v54, 0.0 }
 0x4d0   : > { %v4202_v57 = vpop.f32.mrf.mxu0  ;;  %v4207_v55 = vpop.f32.mrf.mxu1  ;;  %v3363_v31 = vadd.f32 %v3362_v58, %v3361_v62  ;;  %v3376_v44 = vadd.f32 %v3375_v56, %v3374_v30 }
 0x4d2   : > { %v3165_v9 = vpop.f32.mrf.mxu1 }
 0x4d3   : > { %v3377_v22 = vsel %vm342_vm1, %v3165_v9, 0.0 }
 0x4d4   : > { %v4208_v60 = vpop.f32.mrf.mxu1  ;;  %v3378_v32 = vadd.f32 %v3377_v22, %v3376_v44 }
 0x4da   : > { %v3209_v10 = vpop.f32.mrf.mxu0 }
 0x4db   : > { %v3364_v21 = vsel %vm342_vm1, %v3209_v10, 0.0 }
 0x4dc   : > { %v4213_v17 = vpop.f32.mrf.mxu0  ;;  %v3365_v34 = vadd.f32 %v3364_v21, %v3363_v31 }
 0x4de   : > { %v3212_v13 = vpop.f32.mrf.mxu0  ;;  %v3256_v14 = vpop.f32.mrf.mxu1 }
 0x4df   : > { %v3366_v28 = vsel %vm342_vm1, %v3256_v14, 0.0  ;;  %v3379_v39 = vsel %vm342_vm1, %v3212_v13, 0.0 }
 0x4e0   : > { %v4214_v15 = vpop.f32.mrf.mxu0  ;;  %v4219_v6 = vpop.f32.mrf.mxu1  ;;  %v3367_v33 = vadd.f32 %v3366_v28, %v3365_v34  ;;  %v3380_v36 = vadd.f32 %v3379_v39, %v3378_v32 }
 0x4e2   : > { %v3259_v12 = vpop.f32.mrf.mxu1 }
 0x4e3   : > { %v3381_v7 = vsel %vm342_vm1, %v3259_v12, 0.0 }
 0x4e4   : > { %v4220_v25 = vpop.f32.mrf.mxu1  ;;  %v3382_v38 = vadd.f32 %v3381_v7, %v3380_v36 }
 0x4ea   : > { %v3303_v35 = vpop.f32.mrf.mxu0 }
 0x4eb   : > { %v3368_v26 = vsel %vm342_vm1, %v3303_v35, 0.0 }
 0x4ec   : > { %v4225_v63 = vpop.f32.mrf.mxu0  ;;  %v3369_v40 = vadd.f32 %v3368_v26, %v3367_v33 }
 0x4ee   : > { %v3306_v41 = vpop.f32.mrf.mxu0  ;;  %v3350_v0 = vpop.f32.mrf.mxu1 }
 0x4ef   : > { %v3383_v18 = vsel %vm342_vm1, %v3306_v41, 0.0  ;;  %v3370_v45 = vsel %vm342_vm1, %v3350_v0, 0.0 }
 0x4f0   : > { %v3371_v11 = vadd.f32 %v3370_v45, %v3369_v40  ;;  %v4226_v37 = vpop.f32.mrf.mxu0  ;;  %v4231_v42 = vpop.f32.mrf.mxu1  ;;  %v3384_v43 = vadd.f32 %v3383_v18, %v3382_v38 }
 0x4f2   : > { %v3394_v59 = vadd.f32 %v3625_v5, %v3371_v11  ;;  %v3353_v4 = vpop.f32.mrf.mxu1 }
 0x4f3   : > { %v3385_v46 = vsel %vm342_vm1, %v3353_v4, 0.0 }
 0x4f4   : > { %3396 = vst.msk [vmem:[%s244_s17] sm:$0xff] %vm342_vm1, %v3394_v59  ;;  %v3386_v51 = vadd.f32 %v3385_v46, %v3384_v43  ;;  %v4232_v52 = vpop.f32.mrf.mxu1 }
 0x4f6   : > { %v3395_v29 = vadd.f32 %v3625_v5, %v3386_v51 }
 0x4f8   : > { %3397 = vst.msk [vmem:[%s244_s17 + $0x8] sm:$0xff] %vm342_vm1, %v3395_v29 }
 0x4f9   : > { %4449 = shalt.err (!%p4446_p3)
}
 0x4fa   : > { %s4450_s11 = scalar_lea.hbm %s5516_s26, 256  ;;  %s4454_s14 = scalar_lea.hbm %s5569_s6, 512 }
 0x4fb   : > { %p4451_p4 = scmp.ne.s32.totalorder %s5516_s26, %s4450_s11  ;;  %p4455_p9 = scmp.lt.s32.totalorder %s5516_s26, %s5569_s6 }
 0x4fc   : > { %p4456_p10 = scmp.lt.s32.totalorder %s4454_s14, %s4450_s11 }
 0x4fd   : > { %p4452_p7 = pnand %p4451_p4, %p4576_p5 }
 0x4fe   : > { %p4457_p11 = por %p4456_p10, %p4455_p9 }
 0x4ff   : > { %p4453_p8 = pneg %p4452_p7 }
 0x501   : > { %p4458_p12 = pnand %p4457_p11, %p4453_p8 }
 0x503   : > { %4461 = shalt.err (!%p4458_p12)
}
 0x504   : > { %s4501_s17 = smov 128   ;;  %s4502_s19 = smov 8  }
 0x505   : > { %4233 = dma.vmem_to_hbm [thread:$0]  (%p4576_p5), %s5518_s18, 256, %s5516_s26, %s5523_s25, %s4501_s17, %s4501_s17, %s4502_s19  }
 0x506 PF: > { %p4239_p13 = scmp.ge.s32.totalorder %s4496_s24, 2  ;;  %s3427_s20 = sand.u32 1, %s4484_s21  }
 0x507   : > { %s3428_s28 = scalar_lea.sflag [#allocation3], %s3427_s20 }
 0x508   : > { %p4236_p0 = pnand %p4239_p13, %p4580_p6 }
 0x50a   : > { %p4237_p1 = pneg %p4236_p0 }
 0x50c   : > { %4479 = dma.done.wait (%p4237_p1), %s3428_s28, 256  }
 0x50d   : > { %4481 = vsyncadd (%p4237_p1), %s3428_s28, 4294967040  ;;  %p16_p2 = scmp.ge.s32.totalorder %s4563_s27, 4   ;;  %s5572_s21 = smov %s4488_s22 }
 0x50e   : > { %s5573_s22 = smov %s4492_s23  ;;  %s5574_s23 = smov %s4574_s30 }
 0x50f   : > { %s5575_s24 = smov %s4563_s27  ;;  %18 = sbr.rel (!%p16_p2) target bundleno = 3 (0x3), region = 79 }
 0x514   :  { %3433 = vsyncpa [#allocation3], 1 }
 0x515   :  { %3435 = vsyncpa [#allocation3 + $0x1], 1 }

</bundles_post_ra>
